<compile_context>
chip_gen: v7x
topology: tpu7x:2x2x1
jax: 0.10.0
libtpu: 0.0.40
codegen_flags: <defaults>
</compile_context>

<pallas_src>
import jax
import jax.numpy as jnp
from jax.experimental import pallas as pl
from jax.experimental.pallas import tpu as pltpu


# ----------------------------------------------------------------------------
# Fused ensemble + vote + MAE kernel (one image per grid step)
# ----------------------------------------------------------------------------
def end2end_fused(x, cluster_ids, masks, W1, b1, W2, b2, mW1, mb1, mW2, mb2,
                  *, img_h, img_w):
    """x: (B, C, P) bf16 raw image, pixels on lanes.  Returns (B, 1, P) f32."""
    B, C, P = x.shape
    EHd, Kin = W1.shape[1], W1.shape[2]     # E*Hd, C*9
    E = W2.shape[1]
    Hm = mW1.shape[0]
    assert Kin == C * 9 and P == img_h * img_w

    def kernel(cid_ref, x_ref, m_ref, w1_ref, b1_ref, w2_ref, b2_ref,
               mw1_ref, mb1_ref, mw2_ref, mb2_ref, o_ref, slab_ref, taps_ref):
        b = pl.program_id(0)
        cid = cid_ref[b]                              # cluster id of this image

        # Hoisted boundary masks: rows 0..2 = x masks (dx=-1,0,+1),
        # rows 3..5 = y masks (dy=-1,0,+1).  All-ones rows are skipped.
        m = m_ref[...]                                # (8, P) f32

        def tap_mask(dy, dx):
            if dy == 0 and dx == 0:
                return None
            if dy == 0:
                return m[dx + 1:dx + 2, :]
            if dx == 0:
                return m[4 + dy:5 + dy, :]
            return m[dx + 1:dx + 2, :] * m[4 + dy:5 + dy, :]

        # ---- in-VMEM im2col of the raw image (3x3 SAME) via lane rolls ----
        # slab row = tap*C + channel, with tap = (dy+1)*3 + (dx+1).
        xf = x_ref[0].astype(jnp.float32)             # (C, P)
        t = 0
        for dy in (-1, 0, 1):
            for dx in (-1, 0, 1):
                s = dy * img_w + dx
                rolled = xf if s == 0 else pltpu.roll(xf, (-s) % P, 1)
                mk = tap_mask(dy, dx)
                slab_ref[pl.ds(t * C, C), :] = rolled if mk is None else rolled * mk
                t += 1

        # ---- ensemble: all E heads in ONE MXU matmul, cluster-routed ----
        slab = slab_ref[...].astype(jnp.bfloat16)                         # (Kin, P)
        h = jnp.dot(w1_ref[cid], slab, preferred_element_type=jnp.float32)  # (EHd, P)
        h = jnp.maximum(h + b1_ref[cid], 0.0).astype(jnp.bfloat16)        # bias+ReLU, bf16
        z = jnp.dot(w2_ref[cid], h,
                    preferred_element_type=jnp.float32) + b2_ref[cid]     # (E, P)
        # sigmoid via exp (EUP) + approximate reciprocal (EUP) — off the VALU
        preds = pl.reciprocal(1.0 + jnp.exp(-z), approx=True)             # (E, P)

        # ---- soft vote: pixel-wise mean over the ensemble axis ----
        voted = jnp.sum(preds, axis=0, keepdims=True) * (1.0 / E)         # (1, P)

        # ---- MAE head: 3x3 SAME taps of the voted map -> ONE MXU matmul ----
        t = 0
        for dy in (-1, 0, 1):
            for dx in (-1, 0, 1):
                s = dy * img_w + dx
                rolled = voted if s == 0 else pltpu.roll(voted, (-s) % P, 1)
                mk = tap_mask(dy, dx)
                taps_ref[pl.ds(t, 1), :] = rolled if mk is None else rolled * mk
                t += 1
        taps = taps_ref[...].astype(jnp.bfloat16)                          # (9, P)
        hm = jnp.dot(mw1_ref[...], taps, preferred_element_type=jnp.float32)  # (Hm, P)
        hm = jnp.maximum(hm + mb1_ref[...], 0.0).astype(jnp.bfloat16)
        zm = jnp.dot(mw2_ref[...], hm,
                     preferred_element_type=jnp.float32) + mb2_ref[...]    # (1, P)
        o_ref[0] = jax.nn.sigmoid(zm)                 # exact; lane-dense (1, P) store

    grid_spec = pltpu.PrefetchScalarGridSpec(
        num_scalar_prefetch=1,                        # cluster_ids -> SMEM
        grid=(B,),
        in_specs=[
            pl.BlockSpec((1, C, P), lambda b, cid: (b, 0, 0)),      # raw image
            pl.BlockSpec((8, P), lambda b, cid: (0, 0)),            # boundary masks (resident)
            pl.BlockSpec((2, EHd, Kin), lambda b, cid: (0, 0, 0)),  # W1 (resident)
            pl.BlockSpec((2, EHd, 1), lambda b, cid: (0, 0, 0)),    # b1
            pl.BlockSpec((2, E, EHd), lambda b, cid: (0, 0, 0)),    # W2 (block-diag)
            pl.BlockSpec((2, E, 1), lambda b, cid: (0, 0, 0)),      # b2
            pl.BlockSpec((Hm, 9), lambda b, cid: (0, 0)),           # MAE W1
            pl.BlockSpec((Hm, 1), lambda b, cid: (0, 0)),           # MAE b1
            pl.BlockSpec((1, Hm), lambda b, cid: (0, 0)),           # MAE W2
            pl.BlockSpec((1, 1), lambda b, cid: (0, 0)),            # MAE b2
        ],
        out_specs=pl.BlockSpec((1, 1, P), lambda b, cid: (b, 0, 0)),
        scratch_shapes=[
            pltpu.VMEM((Kin, P), jnp.float32),        # im2col patch slab
            pltpu.VMEM((9, P), jnp.float32),          # MAE tap slab
        ],
    )
    return pl.pallas_call(
        kernel,
        grid_spec=grid_spec,
        out_shape=jax.ShapeDtypeStruct((B, 1, P), jnp.float32),
        compiler_params=pltpu.CompilerParams(
            dimension_semantics=("parallel",),        # images independent
            vmem_limit_bytes=32 * 1024 * 1024,        # safe on v5e/v6e/v7x
        ),
    )(cluster_ids, x, masks, W1, b1, W2, b2, mW1, mb1, mW2, mb2)


# ----------------------------------------------------------------------------
# Model wrapper (synthetic weights, packed for the fused kernel)
# ----------------------------------------------------------------------------
class End2EndPallas:
    """Pallas implementation of End2End.forward, mode='voter-then-mae'."""

    def __init__(self, num_ensemble=3, in_ch=3, hidden=32, mae_hidden=32, seed=1):
        self.E, self.Hd, self.Hm, self.C = num_ensemble, hidden, mae_hidden, in_ch
        Kin = in_ch * 9                              # slab row = tap*C + channel
        key = jax.random.PRNGKey(seed)
        ks = jax.random.split(key, 4 * num_ensemble + 4)

        w1_parts, b1_parts, b2_parts = [], [], []
        W2_bd = jnp.zeros((2, num_ensemble, num_ensemble * hidden), jnp.float32)
        for e in range(num_ensemble):
            k0, k1, k2, _ = ks[4 * e: 4 * e + 4]
            # first conv of head e, both clusters, pre-flattened to (Hd, Kin)
            w1_parts.append(jax.random.normal(k0, (2, hidden, Kin), jnp.float32)
                            / (Kin ** 0.5))
            b1_parts.append(jnp.zeros((2, hidden), jnp.float32))
            w2_e = jax.random.normal(k1, (2, hidden), jnp.float32) / (hidden ** 0.5)
            W2_bd = W2_bd.at[:, e, e * hidden:(e + 1) * hidden].set(w2_e)
            b2_parts.append(0.01 * jax.random.normal(k2, (2, 1), jnp.float32))

        self.W1 = jnp.concatenate(w1_parts, axis=1).astype(jnp.bfloat16)  # (2, E*Hd, Kin)
        self.b1 = jnp.concatenate(b1_parts, axis=1)[..., None]            # (2, E*Hd, 1)
        self.W2 = W2_bd.astype(jnp.bfloat16)                              # (2, E, E*Hd)
        self.b2 = jnp.concatenate(b2_parts, axis=1)[..., None]            # (2, E, 1)

        km0, km1, km2, _ = ks[-4:]
        self.mW1 = (jax.random.normal(km0, (mae_hidden, 9), jnp.float32) / 3.0
                    ).astype(jnp.bfloat16)
        self.mb1 = jnp.zeros((mae_hidden, 1), jnp.float32)
        self.mW2 = (jax.random.normal(km1, (1, mae_hidden), jnp.float32)
                    / (mae_hidden ** 0.5)).astype(jnp.bfloat16)
        self.mb2 = 0.01 * jax.random.normal(km2, (1, 1), jnp.float32)

    @staticmethod
    def _boundary_masks(H, W):
        """(8, P) f32: rows 0..2 = x-edge masks (dx=-1,0,+1), 3..5 = y-edge masks."""
        P = H * W
        col = jnp.arange(P, dtype=jnp.int32)
        xi, yi = col % W, col // W
        ones = jnp.ones((P,), jnp.float32)
        zero = jnp.zeros((P,), jnp.float32)
        return jnp.stack([
            (xi >= 1).astype(jnp.float32), ones, (xi <= W - 2).astype(jnp.float32),
            (yi >= 1).astype(jnp.float32), ones, (yi <= H - 2).astype(jnp.float32),
            zero, zero], axis=0)

    def __call__(self, x_tuple):
        x, cluster_ids = x_tuple                      # x: (B, C, H, W) NCHW
        B, C, H, W = x.shape
        P = H * W
        cluster_ids = jnp.reshape(cluster_ids, (-1,)).astype(jnp.int32)

        x_flat = x.reshape(B, C, P).astype(jnp.bfloat16)   # raw pixels only (no im2col)
        masks = self._boundary_masks(H, W)                 # tiny resident input

        out = end2end_fused(x_flat, cluster_ids, masks,
                            self.W1, self.b1, self.W2, self.b2,
                            self.mW1, self.mb1, self.mW2, self.mb2,
                            img_h=H, img_w=W)               # (B, 1, P)
        return out.reshape(B, 1, H, W)

    # TODO(synk): checkpoint loading (load_MAE / load_sota_models), the CPU /
    # numpy round-trips and the voter registry lookup have no Pallas
    # equivalent; weights are synthesized deterministically and the voter is
    # fixed to pixel-wise mean (soft voting).  Real checkpoint conv weights
    # must be flattened to the slab's (tap-major, channel-minor) Kin order.
    # TODO(synk): for large images (e.g. 400x400) the (E*Hd, P) intermediate
    # overflows v7x's 64 MiB VMEM — add a row-tile grid axis with a 1-row halo
    # for the in-kernel 3x3 taps (and mark it 'parallel' for the 2 v7x TCs);
    # at the demo size a full image per grid step fits on all generations.
    # TODO(synk): amortize the ~0.35us/step overhead for tiny images by
    # lane-packing several same-cluster images per grid step, and consider
    # int8 (v5e/v6e) / fp8 (v7x) input quantization for the first matmul.


# ----------------------------------------------------------------------------
# Pure-JAX f32 reference (same bf16-rounded weights) for tolerance checking
# ----------------------------------------------------------------------------
def reference_forward(model, x, cluster_ids):
    B, C, H, W = x.shape
    E, Hd, Hm = model.E, model.Hd, model.Hm
    EHd = E * Hd
    xq = x.astype(jnp.bfloat16).astype(jnp.float32)     # match kernel input quantization
    W1 = model.W1.astype(jnp.float32).reshape(2, EHd, 3, 3, C).transpose(0, 1, 4, 2, 3)
    W2 = model.W2.astype(jnp.float32)
    mW1 = model.mW1.astype(jnp.float32).reshape(Hm, 1, 3, 3)
    mW2 = model.mW2.astype(jnp.float32)
    dn = ('NCHW', 'OIHW', 'NCHW')
    hp = jax.lax.Precision.HIGHEST
    outs = []
    for b in range(B):
        cid = int(cluster_ids[b])
        xb = xq[b:b + 1]
        h = jax.lax.conv_general_dilated(xb, W1[cid], (1, 1), 'SAME',
                                         dimension_numbers=dn, precision=hp)
        h = jnp.maximum(h + model.b1[cid].reshape(1, EHd, 1, 1), 0.0)
        z = jnp.einsum('oc,nchw->nohw', W2[cid], h, precision=hp) \
            + model.b2[cid].reshape(1, E, 1, 1)
        voted = jnp.mean(jax.nn.sigmoid(z), axis=1, keepdims=True)
        hm = jax.lax.conv_general_dilated(voted, mW1, (1, 1), 'SAME',
                                          dimension_numbers=dn, precision=hp)
        hm = jnp.maximum(hm + model.mb1.reshape(1, Hm, 1, 1), 0.0)
        zm = jnp.einsum('oc,nchw->nohw', mW2, hm, precision=hp) \
            + model.mb2.reshape(1, 1, 1, 1)
        outs.append(jax.nn.sigmoid(zm))
    return jnp.concatenate(outs, axis=0)


# ----------------------------------------------------------------------------
if __name__ == "__main__":
    B, C, H, W = 2, 3, 16, 16
    key = jax.random.PRNGKey(0)
    kx, _ = jax.random.split(key)
    x = jax.random.normal(kx, (B, C, H, W), jnp.float32)
    cluster_ids = jnp.array([0, 1], jnp.int32)            # one image per cluster

    model = End2EndPallas(num_ensemble=3, in_ch=C, hidden=32, mae_hidden=32)
    y_hat = jax.block_until_ready(model((x, cluster_ids)))

    assert y_hat.shape == (B, 1, H, W)
    assert y_hat.dtype == jnp.float32
    assert bool(jnp.all(jnp.isfinite(y_hat)))
    assert bool(jnp.all((y_hat >= 0.0) & (y_hat <= 1.0)))    # sigmoid output

    # numerics check against a pure-JAX f32 reference (bf16 weights/intermediates
    # and the EUP approximate reciprocal account for the tolerance)
    y_ref = reference_forward(model, x, cluster_ids)
    max_err = float(jnp.max(jnp.abs(y_hat - y_ref)))
    assert max_err < 5e-2, f"max abs err vs reference: {max_err}"

    print("KERNEL_OK")
</pallas_src>

<mosaic_0001>
module attributes {stable_mosaic.version = 11 : i64} {
  func.func @kernel(%arg0: i32, %arg1: memref<2xi32, #tpu.memory_space<smem>>, %arg2: memref<1x3x256xbf16, #tpu.memory_space<vmem>>, %arg3: memref<8x256xf32, #tpu.memory_space<vmem>>, %arg4: memref<2x96x27xbf16, #tpu.memory_space<vmem>>, %arg5: memref<2x96x1xf32, #tpu.memory_space<vmem>>, %arg6: memref<2x3x96xbf16, #tpu.memory_space<vmem>>, %arg7: memref<2x3x1xf32, #tpu.memory_space<vmem>>, %arg8: memref<32x9xbf16, #tpu.memory_space<vmem>>, %arg9: memref<32x1xf32, #tpu.memory_space<vmem>>, %arg10: memref<1x32xbf16, #tpu.memory_space<vmem>>, %arg11: memref<1x1xf32, #tpu.memory_space<vmem>>, %arg12: memref<1x1x256xf32, #tpu.memory_space<vmem>>, %arg13: memref<27x256xf32, #tpu.memory_space<vmem>>, %arg14: memref<9x256xf32, #tpu.memory_space<vmem>>) attributes {dimension_semantics = [#tpu.dimension_semantics<parallel>], iteration_bounds = array<i64: 2>, scalar_prefetch = 1 : i64, scratch_operands = 2 : i64, tpu.core_type = #tpu.core_type<tc>, window_params = [{transform_indices = @transform_0, window_bounds = array<i64: 1, 3, 256>}, {pipeline_mode = #tpu.pipeline_mode<synchronous>, transform_indices = @transform_1, window_bounds = array<i64: 8, 256>}, {pipeline_mode = #tpu.pipeline_mode<synchronous>, transform_indices = @transform_2, window_bounds = array<i64: 2, 96, 27>}, {pipeline_mode = #tpu.pipeline_mode<synchronous>, transform_indices = @transform_3, window_bounds = array<i64: 2, 96, 1>}, {pipeline_mode = #tpu.pipeline_mode<synchronous>, transform_indices = @transform_4, window_bounds = array<i64: 2, 3, 96>}, {pipeline_mode = #tpu.pipeline_mode<synchronous>, transform_indices = @transform_5, window_bounds = array<i64: 2, 3, 1>}, {pipeline_mode = #tpu.pipeline_mode<synchronous>, transform_indices = @transform_6, window_bounds = array<i64: 32, 9>}, {pipeline_mode = #tpu.pipeline_mode<synchronous>, transform_indices = @transform_7, window_bounds = array<i64: 32, 1>}, {pipeline_mode = #tpu.pipeline_mode<synchronous>, transform_indices = @transform_8, window_bounds = array<i64: 1, 32>}, {pipeline_mode = #tpu.pipeline_mode<synchronous>, transform_indices = @transform_9, window_bounds = array<i64: 1, 1>}, {transform_indices = @transform_10, window_bounds = array<i64: 1, 1, 256>}]} {
    %0 = arith.index_cast %arg0 : i32 to index
    %1 = memref.load %arg1[%0] : memref<2xi32, #tpu.memory_space<smem>>
    %c0 = arith.constant 0 : index
    %c0_0 = arith.constant 0 : index
    %2 = vector.load %arg3[%c0, %c0_0] : memref<8x256xf32, #tpu.memory_space<vmem>>, vector<8x256xf32>
    %c0_1 = arith.constant 0 : index
    %c0_2 = arith.constant 0 : index
    %c0_3 = arith.constant 0 : index
    %3 = vector.load %arg2[%c0_1, %c0_2, %c0_3] : memref<1x3x256xbf16, #tpu.memory_space<vmem>>, vector<1x3x256xbf16>
    %4 = vector.shape_cast %3 : vector<1x3x256xbf16> to vector<3x256xbf16>
    %5 = arith.extf %4 : vector<3x256xbf16> to vector<3x256xf32>
    %c17_i32 = arith.constant 17 : i32
    %6 = tpu.dynamic_rotate %5 by %c17_i32 dim 1 : vector<3x256xf32>, i32 -> vector<3x256xf32>
    %7 = vector.extract_strided_slice %2 {offsets = [0, 0], sizes = [1, 256], strides = [1, 1]} : vector<8x256xf32> to vector<1x256xf32>
    %8 = vector.extract_strided_slice %2 {offsets = [3, 0], sizes = [1, 256], strides = [1, 1]} : vector<8x256xf32> to vector<1x256xf32>
    %9 = arith.mulf %7, %8 : vector<1x256xf32>
    %10 = vector.broadcast %9 : vector<1x256xf32> to vector<3x256xf32>
    %11 = arith.mulf %6, %10 : vector<3x256xf32>
    %c0_4 = arith.constant 0 : index
    %c0_5 = arith.constant 0 : index
    %12 = vector.load %arg13[%c0_4, %c0_5] : memref<27x256xf32, #tpu.memory_space<vmem>>, vector<3x256xf32>
    tpu.vector_store %arg13[%c0_4, %c0_5], %11 {strides = array<i32>} : memref<27x256xf32, #tpu.memory_space<vmem>>, vector<3x256xf32>,
    %c16_i32 = arith.constant 16 : i32
    %13 = tpu.dynamic_rotate %5 by %c16_i32 dim 1 : vector<3x256xf32>, i32 -> vector<3x256xf32>
    %14 = vector.extract_strided_slice %2 {offsets = [3, 0], sizes = [1, 256], strides = [1, 1]} : vector<8x256xf32> to vector<1x256xf32>
    %15 = vector.broadcast %14 : vector<1x256xf32> to vector<3x256xf32>
    %16 = arith.mulf %13, %15 : vector<3x256xf32>
    %c3 = arith.constant 3 : index
    %c0_6 = arith.constant 0 : index
    %17 = vector.load %arg13[%c3, %c0_6] : memref<27x256xf32, #tpu.memory_space<vmem>>, vector<3x256xf32>
    tpu.vector_store %arg13[%c3, %c0_6], %16 {strides = array<i32>} : memref<27x256xf32, #tpu.memory_space<vmem>>, vector<3x256xf32>,
    %c15_i32 = arith.constant 15 : i32
    %18 = tpu.dynamic_rotate %5 by %c15_i32 dim 1 : vector<3x256xf32>, i32 -> vector<3x256xf32>
    %19 = vector.extract_strided_slice %2 {offsets = [2, 0], sizes = [1, 256], strides = [1, 1]} : vector<8x256xf32> to vector<1x256xf32>
    %20 = vector.extract_strided_slice %2 {offsets = [3, 0], sizes = [1, 256], strides = [1, 1]} : vector<8x256xf32> to vector<1x256xf32>
    %21 = arith.mulf %19, %20 : vector<1x256xf32>
    %22 = vector.broadcast %21 : vector<1x256xf32> to vector<3x256xf32>
    %23 = arith.mulf %18, %22 : vector<3x256xf32>
    %c6 = arith.constant 6 : index
    %c0_7 = arith.constant 0 : index
    %24 = vector.load %arg13[%c6, %c0_7] : memref<27x256xf32, #tpu.memory_space<vmem>>, vector<3x256xf32>
    tpu.vector_store %arg13[%c6, %c0_7], %23 {strides = array<i32>} : memref<27x256xf32, #tpu.memory_space<vmem>>, vector<3x256xf32>,
    %c1_i32 = arith.constant 1 : i32
    %25 = tpu.dynamic_rotate %5 by %c1_i32 dim 1 : vector<3x256xf32>, i32 -> vector<3x256xf32>
    %26 = vector.extract_strided_slice %2 {offsets = [0, 0], sizes = [1, 256], strides = [1, 1]} : vector<8x256xf32> to vector<1x256xf32>
    %27 = vector.broadcast %26 : vector<1x256xf32> to vector<3x256xf32>
    %28 = arith.mulf %25, %27 : vector<3x256xf32>
    %c9 = arith.constant 9 : index
    %c0_8 = arith.constant 0 : index
    %29 = vector.load %arg13[%c9, %c0_8] : memref<27x256xf32, #tpu.memory_space<vmem>>, vector<3x256xf32>
    tpu.vector_store %arg13[%c9, %c0_8], %28 {strides = array<i32>} : memref<27x256xf32, #tpu.memory_space<vmem>>, vector<3x256xf32>,
    %c12 = arith.constant 12 : index
    %c0_9 = arith.constant 0 : index
    %30 = vector.load %arg13[%c12, %c0_9] : memref<27x256xf32, #tpu.memory_space<vmem>>, vector<3x256xf32>
    tpu.vector_store %arg13[%c12, %c0_9], %5 {strides = array<i32>} : memref<27x256xf32, #tpu.memory_space<vmem>>, vector<3x256xf32>,
    %c255_i32 = arith.constant 255 : i32
    %31 = tpu.dynamic_rotate %5 by %c255_i32 dim 1 : vector<3x256xf32>, i32 -> vector<3x256xf32>
    %32 = vector.extract_strided_slice %2 {offsets = [2, 0], sizes = [1, 256], strides = [1, 1]} : vector<8x256xf32> to vector<1x256xf32>
    %33 = vector.broadcast %32 : vector<1x256xf32> to vector<3x256xf32>
    %34 = arith.mulf %31, %33 : vector<3x256xf32>
    %c15 = arith.constant 15 : index
    %c0_10 = arith.constant 0 : index
    %35 = vector.load %arg13[%c15, %c0_10] : memref<27x256xf32, #tpu.memory_space<vmem>>, vector<3x256xf32>
    tpu.vector_store %arg13[%c15, %c0_10], %34 {strides = array<i32>} : memref<27x256xf32, #tpu.memory_space<vmem>>, vector<3x256xf32>,
    %c241_i32 = arith.constant 241 : i32
    %36 = tpu.dynamic_rotate %5 by %c241_i32 dim 1 : vector<3x256xf32>, i32 -> vector<3x256xf32>
    %37 = vector.extract_strided_slice %2 {offsets = [0, 0], sizes = [1, 256], strides = [1, 1]} : vector<8x256xf32> to vector<1x256xf32>
    %38 = vector.extract_strided_slice %2 {offsets = [5, 0], sizes = [1, 256], strides = [1, 1]} : vector<8x256xf32> to vector<1x256xf32>
    %39 = arith.mulf %37, %38 : vector<1x256xf32>
    %40 = vector.broadcast %39 : vector<1x256xf32> to vector<3x256xf32>
    %41 = arith.mulf %36, %40 : vector<3x256xf32>
    %c18 = arith.constant 18 : index
    %c0_11 = arith.constant 0 : index
    %42 = vector.load %arg13[%c18, %c0_11] : memref<27x256xf32, #tpu.memory_space<vmem>>, vector<3x256xf32>
    tpu.vector_store %arg13[%c18, %c0_11], %41 {strides = array<i32>} : memref<27x256xf32, #tpu.memory_space<vmem>>, vector<3x256xf32>,
    %c240_i32 = arith.constant 240 : i32
    %43 = tpu.dynamic_rotate %5 by %c240_i32 dim 1 : vector<3x256xf32>, i32 -> vector<3x256xf32>
    %44 = vector.extract_strided_slice %2 {offsets = [5, 0], sizes = [1, 256], strides = [1, 1]} : vector<8x256xf32> to vector<1x256xf32>
    %45 = vector.broadcast %44 : vector<1x256xf32> to vector<3x256xf32>
    %46 = arith.mulf %43, %45 : vector<3x256xf32>
    %c21 = arith.constant 21 : index
    %c0_12 = arith.constant 0 : index
    %47 = vector.load %arg13[%c21, %c0_12] : memref<27x256xf32, #tpu.memory_space<vmem>>, vector<3x256xf32>
    tpu.vector_store %arg13[%c21, %c0_12], %46 {strides = array<i32>} : memref<27x256xf32, #tpu.memory_space<vmem>>, vector<3x256xf32>,
    %c239_i32 = arith.constant 239 : i32
    %48 = tpu.dynamic_rotate %5 by %c239_i32 dim 1 : vector<3x256xf32>, i32 -> vector<3x256xf32>
    %49 = vector.extract_strided_slice %2 {offsets = [2, 0], sizes = [1, 256], strides = [1, 1]} : vector<8x256xf32> to vector<1x256xf32>
    %50 = vector.extract_strided_slice %2 {offsets = [5, 0], sizes = [1, 256], strides = [1, 1]} : vector<8x256xf32> to vector<1x256xf32>
    %51 = arith.mulf %49, %50 : vector<1x256xf32>
    %52 = vector.broadcast %51 : vector<1x256xf32> to vector<3x256xf32>
    %53 = arith.mulf %48, %52 : vector<3x256xf32>
    %c24 = arith.constant 24 : index
    %c0_13 = arith.constant 0 : index
    %54 = vector.load %arg13[%c24, %c0_13] : memref<27x256xf32, #tpu.memory_space<vmem>>, vector<3x256xf32>
    tpu.vector_store %arg13[%c24, %c0_13], %53 {strides = array<i32>} : memref<27x256xf32, #tpu.memory_space<vmem>>, vector<3x256xf32>,
    %c0_14 = arith.constant 0 : index
    %c0_15 = arith.constant 0 : index
    %55 = vector.load %arg13[%c0_14, %c0_15] : memref<27x256xf32, #tpu.memory_space<vmem>>, vector<27x256xf32>
    %56 = arith.truncf %55 : vector<27x256xf32> to vector<27x256xbf16>
    %57 = arith.index_cast %1 : i32 to index
    %c0_16 = arith.constant 0 : index
    %c0_17 = arith.constant 0 : index
    %58 = vector.load %arg4[%57, %c0_16, %c0_17] : memref<2x96x27xbf16, #tpu.memory_space<vmem>>, vector<1x96x27xbf16>
    %59 = vector.shape_cast %58 : vector<1x96x27xbf16> to vector<96x27xbf16>
    %cst = arith.constant dense<0.000000e+00> : vector<96x256xf32>
    %60 = tpu.matmul %59, %56, %cst {dimension_numbers = #tpu.dot_dimension_numbers<[1], [0], [0], [1], [0, 0, 1, 1], [], []>} : vector<96x27xbf16>, vector<27x256xbf16>, vector<96x256xf32> -> vector<96x256xf32>
    %61 = arith.index_cast %1 : i32 to index
    %c0_18 = arith.constant 0 : index
    %c0_19 = arith.constant 0 : index
    %62 = vector.load %arg5[%61, %c0_18, %c0_19] : memref<2x96x1xf32, #tpu.memory_space<vmem>>, vector<1x96x1xf32>
    %63 = vector.shape_cast %62 : vector<1x96x1xf32> to vector<96x1xf32>
    %64 = vector.broadcast %63 : vector<96x1xf32> to vector<96x256xf32>
    %65 = arith.addf %60, %64 : vector<96x256xf32>
    %cst_20 = arith.constant 0.000000e+00 : f32
    %66 = vector.broadcast %cst_20 : f32 to vector<96x256xf32>
    %67 = arith.maximumf %65, %66 : vector<96x256xf32>
    %68 = arith.truncf %67 : vector<96x256xf32> to vector<96x256xbf16>
    %69 = arith.index_cast %1 : i32 to index
    %c0_21 = arith.constant 0 : index
    %c0_22 = arith.constant 0 : index
    %70 = vector.load %arg6[%69, %c0_21, %c0_22] : memref<2x3x96xbf16, #tpu.memory_space<vmem>>, vector<1x3x96xbf16>
    %71 = vector.shape_cast %70 : vector<1x3x96xbf16> to vector<3x96xbf16>
    %cst_23 = arith.constant dense<0.000000e+00> : vector<3x256xf32>
    %72 = tpu.matmul %71, %68, %cst_23 {dimension_numbers = #tpu.dot_dimension_numbers<[1], [0], [0], [1], [0, 0, 1, 1], [], []>} : vector<3x96xbf16>, vector<96x256xbf16>, vector<3x256xf32> -> vector<3x256xf32>
    %73 = arith.index_cast %1 : i32 to index
    %c0_24 = arith.constant 0 : index
    %c0_25 = arith.constant 0 : index
    %74 = vector.load %arg7[%73, %c0_24, %c0_25] : memref<2x3x1xf32, #tpu.memory_space<vmem>>, vector<1x3x1xf32>
    %75 = vector.shape_cast %74 : vector<1x3x1xf32> to vector<3x1xf32>
    %76 = vector.broadcast %75 : vector<3x1xf32> to vector<3x256xf32>
    %77 = arith.addf %72, %76 : vector<3x256xf32>
    %cst_26 = arith.constant 0.000000e+00 : f32
    %78 = vector.broadcast %cst_26 : f32 to vector<3x256xf32>
    %79 = arith.subf %78, %77 : vector<3x256xf32>
    %80 = math.exp %79 : vector<3x256xf32>
    %cst_27 = arith.constant 1.000000e+00 : f32
    %81 = vector.broadcast %cst_27 : f32 to vector<3x256xf32>
    %82 = arith.addf %81, %80 : vector<3x256xf32>
    %83 = tpu.reciprocal %82 {approx = true} : vector<3x256xf32> -> vector<3x256xf32>
    %cst_28 = arith.constant dense<0.000000e+00> : vector<256xf32>
    %84 = vector.multi_reduction <add>, %83, %cst_28 [0] : vector<3x256xf32> to vector<256xf32>
    %85 = vector.shape_cast %84 : vector<256xf32> to vector<1x256xf32>
    %cst_29 = arith.constant 0.333333343 : f32
    %86 = vector.broadcast %cst_29 : f32 to vector<1x256xf32>
    %87 = arith.mulf %85, %86 : vector<1x256xf32>
    %c17_i32_30 = arith.constant 17 : i32
    %88 = tpu.dynamic_rotate %87 by %c17_i32_30 dim 1 : vector<1x256xf32>, i32 -> vector<1x256xf32>
    %89 = vector.extract_strided_slice %2 {offsets = [0, 0], sizes = [1, 256], strides = [1, 1]} : vector<8x256xf32> to vector<1x256xf32>
    %90 = vector.extract_strided_slice %2 {offsets = [3, 0], sizes = [1, 256], strides = [1, 1]} : vector<8x256xf32> to vector<1x256xf32>
    %91 = arith.mulf %89, %90 : vector<1x256xf32>
    %92 = arith.mulf %88, %91 : vector<1x256xf32>
    %c0_31 = arith.constant 0 : index
    %c0_32 = arith.constant 0 : index
    %93 = vector.load %arg14[%c0_31, %c0_32] : memref<9x256xf32, #tpu.memory_space<vmem>>, vector<1x256xf32>
    tpu.vector_store %arg14[%c0_31, %c0_32], %92 {strides = array<i32>} : memref<9x256xf32, #tpu.memory_space<vmem>>, vector<1x256xf32>,
    %c16_i32_33 = arith.constant 16 : i32
    %94 = tpu.dynamic_rotate %87 by %c16_i32_33 dim 1 : vector<1x256xf32>, i32 -> vector<1x256xf32>
    %95 = vector.extract_strided_slice %2 {offsets = [3, 0], sizes = [1, 256], strides = [1, 1]} : vector<8x256xf32> to vector<1x256xf32>
    %96 = arith.mulf %94, %95 : vector<1x256xf32>
    %c1 = arith.constant 1 : index
    %c0_34 = arith.constant 0 : index
    %97 = vector.load %arg14[%c1, %c0_34] : memref<9x256xf32, #tpu.memory_space<vmem>>, vector<1x256xf32>
    tpu.vector_store %arg14[%c1, %c0_34], %96 {strides = array<i32>} : memref<9x256xf32, #tpu.memory_space<vmem>>, vector<1x256xf32>,
    %c15_i32_35 = arith.constant 15 : i32
    %98 = tpu.dynamic_rotate %87 by %c15_i32_35 dim 1 : vector<1x256xf32>, i32 -> vector<1x256xf32>
    %99 = vector.extract_strided_slice %2 {offsets = [2, 0], sizes = [1, 256], strides = [1, 1]} : vector<8x256xf32> to vector<1x256xf32>
    %100 = vector.extract_strided_slice %2 {offsets = [3, 0], sizes = [1, 256], strides = [1, 1]} : vector<8x256xf32> to vector<1x256xf32>
    %101 = arith.mulf %99, %100 : vector<1x256xf32>
    %102 = arith.mulf %98, %101 : vector<1x256xf32>
    %c2 = arith.constant 2 : index
    %c0_36 = arith.constant 0 : index
    %103 = vector.load %arg14[%c2, %c0_36] : memref<9x256xf32, #tpu.memory_space<vmem>>, vector<1x256xf32>
    tpu.vector_store %arg14[%c2, %c0_36], %102 {strides = array<i32>} : memref<9x256xf32, #tpu.memory_space<vmem>>, vector<1x256xf32>,
    %c1_i32_37 = arith.constant 1 : i32
    %104 = tpu.dynamic_rotate %87 by %c1_i32_37 dim 1 : vector<1x256xf32>, i32 -> vector<1x256xf32>
    %105 = vector.extract_strided_slice %2 {offsets = [0, 0], sizes = [1, 256], strides = [1, 1]} : vector<8x256xf32> to vector<1x256xf32>
    %106 = arith.mulf %104, %105 : vector<1x256xf32>
    %c3_38 = arith.constant 3 : index
    %c0_39 = arith.constant 0 : index
    %107 = vector.load %arg14[%c3_38, %c0_39] : memref<9x256xf32, #tpu.memory_space<vmem>>, vector<1x256xf32>
    tpu.vector_store %arg14[%c3_38, %c0_39], %106 {strides = array<i32>} : memref<9x256xf32, #tpu.memory_space<vmem>>, vector<1x256xf32>,
    %c4 = arith.constant 4 : index
    %c0_40 = arith.constant 0 : index
    %108 = vector.load %arg14[%c4, %c0_40] : memref<9x256xf32, #tpu.memory_space<vmem>>, vector<1x256xf32>
    tpu.vector_store %arg14[%c4, %c0_40], %87 {strides = array<i32>} : memref<9x256xf32, #tpu.memory_space<vmem>>, vector<1x256xf32>,
    %c255_i32_41 = arith.constant 255 : i32
    %109 = tpu.dynamic_rotate %87 by %c255_i32_41 dim 1 : vector<1x256xf32>, i32 -> vector<1x256xf32>
    %110 = vector.extract_strided_slice %2 {offsets = [2, 0], sizes = [1, 256], strides = [1, 1]} : vector<8x256xf32> to vector<1x256xf32>
    %111 = arith.mulf %109, %110 : vector<1x256xf32>
    %c5 = arith.constant 5 : index
    %c0_42 = arith.constant 0 : index
    %112 = vector.load %arg14[%c5, %c0_42] : memref<9x256xf32, #tpu.memory_space<vmem>>, vector<1x256xf32>
    tpu.vector_store %arg14[%c5, %c0_42], %111 {strides = array<i32>} : memref<9x256xf32, #tpu.memory_space<vmem>>, vector<1x256xf32>,
    %c241_i32_43 = arith.constant 241 : i32
    %113 = tpu.dynamic_rotate %87 by %c241_i32_43 dim 1 : vector<1x256xf32>, i32 -> vector<1x256xf32>
    %114 = vector.extract_strided_slice %2 {offsets = [0, 0], sizes = [1, 256], strides = [1, 1]} : vector<8x256xf32> to vector<1x256xf32>
    %115 = vector.extract_strided_slice %2 {offsets = [5, 0], sizes = [1, 256], strides = [1, 1]} : vector<8x256xf32> to vector<1x256xf32>
    %116 = arith.mulf %114, %115 : vector<1x256xf32>
    %117 = arith.mulf %113, %116 : vector<1x256xf32>
    %c6_44 = arith.constant 6 : index
    %c0_45 = arith.constant 0 : index
    %118 = vector.load %arg14[%c6_44, %c0_45] : memref<9x256xf32, #tpu.memory_space<vmem>>, vector<1x256xf32>
    tpu.vector_store %arg14[%c6_44, %c0_45], %117 {strides = array<i32>} : memref<9x256xf32, #tpu.memory_space<vmem>>, vector<1x256xf32>,
    %c240_i32_46 = arith.constant 240 : i32
    %119 = tpu.dynamic_rotate %87 by %c240_i32_46 dim 1 : vector<1x256xf32>, i32 -> vector<1x256xf32>
    %120 = vector.extract_strided_slice %2 {offsets = [5, 0], sizes = [1, 256], strides = [1, 1]} : vector<8x256xf32> to vector<1x256xf32>
    %121 = arith.mulf %119, %120 : vector<1x256xf32>
    %c7 = arith.constant 7 : index
    %c0_47 = arith.constant 0 : index
    %122 = vector.load %arg14[%c7, %c0_47] : memref<9x256xf32, #tpu.memory_space<vmem>>, vector<1x256xf32>
    tpu.vector_store %arg14[%c7, %c0_47], %121 {strides = array<i32>} : memref<9x256xf32, #tpu.memory_space<vmem>>, vector<1x256xf32>,
    %c239_i32_48 = arith.constant 239 : i32
    %123 = tpu.dynamic_rotate %87 by %c239_i32_48 dim 1 : vector<1x256xf32>, i32 -> vector<1x256xf32>
    %124 = vector.extract_strided_slice %2 {offsets = [2, 0], sizes = [1, 256], strides = [1, 1]} : vector<8x256xf32> to vector<1x256xf32>
    %125 = vector.extract_strided_slice %2 {offsets = [5, 0], sizes = [1, 256], strides = [1, 1]} : vector<8x256xf32> to vector<1x256xf32>
    %126 = arith.mulf %124, %125 : vector<1x256xf32>
    %127 = arith.mulf %123, %126 : vector<1x256xf32>
    %c8 = arith.constant 8 : index
    %c0_49 = arith.constant 0 : index
    %128 = vector.load %arg14[%c8, %c0_49] : memref<9x256xf32, #tpu.memory_space<vmem>>, vector<1x256xf32>
    tpu.vector_store %arg14[%c8, %c0_49], %127 {strides = array<i32>} : memref<9x256xf32, #tpu.memory_space<vmem>>, vector<1x256xf32>,
    %c0_50 = arith.constant 0 : index
    %c0_51 = arith.constant 0 : index
    %129 = vector.load %arg14[%c0_50, %c0_51] : memref<9x256xf32, #tpu.memory_space<vmem>>, vector<9x256xf32>
    %130 = arith.truncf %129 : vector<9x256xf32> to vector<9x256xbf16>
    %c0_52 = arith.constant 0 : index
    %c0_53 = arith.constant 0 : index
    %131 = vector.load %arg8[%c0_52, %c0_53] : memref<32x9xbf16, #tpu.memory_space<vmem>>, vector<32x9xbf16>
    %cst_54 = arith.constant dense<0.000000e+00> : vector<32x256xf32>
    %132 = tpu.matmul %131, %130, %cst_54 {dimension_numbers = #tpu.dot_dimension_numbers<[1], [0], [0], [1], [0, 0, 1, 1], [], []>} : vector<32x9xbf16>, vector<9x256xbf16>, vector<32x256xf32> -> vector<32x256xf32>
    %c0_55 = arith.constant 0 : index
    %c0_56 = arith.constant 0 : index
    %133 = vector.load %arg9[%c0_55, %c0_56] : memref<32x1xf32, #tpu.memory_space<vmem>>, vector<32x1xf32>
    %134 = vector.broadcast %133 : vector<32x1xf32> to vector<32x256xf32>
    %135 = arith.addf %132, %134 : vector<32x256xf32>
    %cst_57 = arith.constant 0.000000e+00 : f32
    %136 = vector.broadcast %cst_57 : f32 to vector<32x256xf32>
    %137 = arith.maximumf %135, %136 : vector<32x256xf32>
    %138 = arith.truncf %137 : vector<32x256xf32> to vector<32x256xbf16>
    %c0_58 = arith.constant 0 : index
    %c0_59 = arith.constant 0 : index
    %139 = vector.load %arg10[%c0_58, %c0_59] : memref<1x32xbf16, #tpu.memory_space<vmem>>, vector<1x32xbf16>
    %cst_60 = arith.constant dense<0.000000e+00> : vector<1x256xf32>
    %140 = tpu.matmul %139, %138, %cst_60 {dimension_numbers = #tpu.dot_dimension_numbers<[1], [0], [0], [1], [0, 0, 1, 1], [], []>} : vector<1x32xbf16>, vector<32x256xbf16>, vector<1x256xf32> -> vector<1x256xf32>
    %c0_61 = arith.constant 0 : index
    %c0_62 = arith.constant 0 : index
    %141 = vector.load %arg11[%c0_61, %c0_62] : memref<1x1xf32, #tpu.memory_space<vmem>>, vector<1x1xf32>
    %142 = vector.broadcast %141 : vector<1x1xf32> to vector<1x256xf32>
    %143 = arith.addf %140, %142 : vector<1x256xf32>
    %144 = arith.negf %143 : vector<1x256xf32>
    %145 = math.exp %144 : vector<1x256xf32>
    %cst_63 = arith.constant 1.000000e+00 : f32
    %146 = vector.broadcast %cst_63 : f32 to vector<1x256xf32>
    %147 = arith.addf %146, %145 : vector<1x256xf32>
    %148 = arith.divf %146, %147 : vector<1x256xf32>
    %c0_64 = arith.constant 0 : index
    %c0_65 = arith.constant 0 : index
    %c0_66 = arith.constant 0 : index
    %149 = vector.load %arg12[%c0_64, %c0_65, %c0_66] : memref<1x1x256xf32, #tpu.memory_space<vmem>>, vector<1x1x256xf32>
    %150 = vector.shape_cast %149 : vector<1x1x256xf32> to vector<1x256xf32>
    %151 = vector.shape_cast %148 : vector<1x256xf32> to vector<1x1x256xf32>
    tpu.vector_store %arg12[%c0_64, %c0_65, %c0_66], %151 {strides = array<i32>} : memref<1x1x256xf32, #tpu.memory_space<vmem>>, vector<1x1x256xf32>,
    return
  }
  func.func @transform_0(%arg0: i32, %arg1: memref<2xi32, #tpu.memory_space<smem>>) -> (i32, i32, i32) {
    %c0_i32 = arith.constant 0 : i32
    %c0_i32_0 = arith.constant 0 : i32
    %c0_i32_1 = arith.constant 0 : i32
    return %arg0, %c0_i32, %c0_i32_0 : i32, i32, i32
  }
  func.func @transform_1(%arg0: i32, %arg1: memref<2xi32, #tpu.memory_space<smem>>) -> (i32, i32) {
    %c0_i32 = arith.constant 0 : i32
    %c0_i32_0 = arith.constant 0 : i32
    %c0_i32_1 = arith.constant 0 : i32
    return %c0_i32, %c0_i32_0 : i32, i32
  }
  func.func @transform_2(%arg0: i32, %arg1: memref<2xi32, #tpu.memory_space<smem>>) -> (i32, i32, i32) {
    %c0_i32 = arith.constant 0 : i32
    %c0_i32_0 = arith.constant 0 : i32
    %c0_i32_1 = arith.constant 0 : i32
    %c0_i32_2 = arith.constant 0 : i32
    return %c0_i32, %c0_i32_0, %c0_i32_1 : i32, i32, i32
  }
  func.func @transform_3(%arg0: i32, %arg1: memref<2xi32, #tpu.memory_space<smem>>) -> (i32, i32, i32) {
    %c0_i32 = arith.constant 0 : i32
    %c0_i32_0 = arith.constant 0 : i32
    %c0_i32_1 = arith.constant 0 : i32
    %c0_i32_2 = arith.constant 0 : i32
    return %c0_i32, %c0_i32_0, %c0_i32_1 : i32, i32, i32
  }
  func.func @transform_4(%arg0: i32, %arg1: memref<2xi32, #tpu.memory_space<smem>>) -> (i32, i32, i32) {
    %c0_i32 = arith.constant 0 : i32
    %c0_i32_0 = arith.constant 0 : i32
    %c0_i32_1 = arith.constant 0 : i32
    %c0_i32_2 = arith.constant 0 : i32
    return %c0_i32, %c0_i32_0, %c0_i32_1 : i32, i32, i32
  }
  func.func @transform_5(%arg0: i32, %arg1: memref<2xi32, #tpu.memory_space<smem>>) -> (i32, i32, i32) {
    %c0_i32 = arith.constant 0 : i32
    %c0_i32_0 = arith.constant 0 : i32
    %c0_i32_1 = arith.constant 0 : i32
    %c0_i32_2 = arith.constant 0 : i32
    return %c0_i32, %c0_i32_0, %c0_i32_1 : i32, i32, i32
  }
  func.func @transform_6(%arg0: i32, %arg1: memref<2xi32, #tpu.memory_space<smem>>) -> (i32, i32) {
    %c0_i32 = arith.constant 0 : i32
    %c0_i32_0 = arith.constant 0 : i32
    %c0_i32_1 = arith.constant 0 : i32
    return %c0_i32, %c0_i32_0 : i32, i32
  }
  func.func @transform_7(%arg0: i32, %arg1: memref<2xi32, #tpu.memory_space<smem>>) -> (i32, i32) {
    %c0_i32 = arith.constant 0 : i32
    %c0_i32_0 = arith.constant 0 : i32
    %c0_i32_1 = arith.constant 0 : i32
    return %c0_i32, %c0_i32_0 : i32, i32
  }
  func.func @transform_8(%arg0: i32, %arg1: memref<2xi32, #tpu.memory_space<smem>>) -> (i32, i32) {
    %c0_i32 = arith.constant 0 : i32
    %c0_i32_0 = arith.constant 0 : i32
    %c0_i32_1 = arith.constant 0 : i32
    return %c0_i32, %c0_i32_0 : i32, i32
  }
  func.func @transform_9(%arg0: i32, %arg1: memref<2xi32, #tpu.memory_space<smem>>) -> (i32, i32) {
    %c0_i32 = arith.constant 0 : i32
    %c0_i32_0 = arith.constant 0 : i32
    %c0_i32_1 = arith.constant 0 : i32
    return %c0_i32, %c0_i32_0 : i32, i32
  }
  func.func @transform_10(%arg0: i32, %arg1: memref<2xi32, #tpu.memory_space<smem>>) -> (i32, i32, i32) {
    %c0_i32 = arith.constant 0 : i32
    %c0_i32_0 = arith.constant 0 : i32
    %c0_i32_1 = arith.constant 0 : i32
    return %arg0, %c0_i32, %c0_i32_0 : i32, i32, i32
  }
}

</mosaic_0001>

<bundles_post_ra>
// kernel: tpu_custom_call.1
= control target key start
LH: loop header
LB: loop body
LE: loop exit
PB: predicated region body
PF: predicated region fallthrough
CT: control target
= control target key end

     0   :  { %s2281_s0 = inlined_call_operand.vmem [shape: s32[2], index: 0, kind: input, shape index: {}]   ;;  %s2282_s1 = inlined_call_operand.vmem [shape: bf16[2,3,256], index: 1, kind: input, shape index: {}]   ;;  %s2283_s2 = inlined_call_operand.vmem [shape: f32[8,256], index: 2, kind: input, shape index: {}]   ;;  %s2284_s3 = inlined_call_operand.vmem [shape: bf16[2,96,27], index: 3, kind: input, shape index: {}]   ;;  %s2285_s4 = inlined_call_operand.vmem [shape: f32[2,96,1], index: 4, kind: input, shape index: {}]   ;;  %s2286_s5 = inlined_call_operand.vmem [shape: bf16[2,3,96], index: 5, kind: input, shape index: {}]   ;;  %s2287_s6 = inlined_call_operand.vmem [shape: f32[2,3,1], index: 6, kind: input, shape index: {}]   ;;  %s2288_s7 = inlined_call_operand.vmem [shape: bf16[32,9], index: 7, kind: input, shape index: {}]   ;;  %s2289_s8 = inlined_call_operand.vmem [shape: f32[32,1], index: 8, kind: input, shape index: {}]   ;;  %s2290_s9 = inlined_call_operand.vmem [shape: bf16[1,32], index: 9, kind: input, shape index: {}]   ;;  %s2291_s11 = inlined_call_operand.hbm [shape: f32[2,1,256], index: 11, kind: output, shape index: {}]   ;;  %s2292_s10 = inlined_call_operand.<no memory space> [shape: f32[1,1], index: 10, kind: input, shape index: {}]  }
   0x1   :  { %s16_s19 = sshll.u32 %s2281_s0, 4  ;;  %v20_v0 = vstv %s2292_s10  ;;  %s17_s19 = int_to_ptr.vmem [resolvable:$true] %s16_s19 }
   0x2   :  { %21 = vst [vmem:[#allocation6] sm:$0x1] %v20_v0  ;;  %s1687_s22 = scalar_lea.vmem %s17_s19, 16  ;;  %p1692_p1 = scmp.lt.s32.totalorder %s17_s19, %s17_s19 }
   0x3   :  { %p1688_p0 = scmp.ne.s32.totalorder %s17_s19, %s1687_s22  ;;  %p1693_p2 = scmp.lt.s32.totalorder %s1687_s22, %s1687_s22 }
   0x5   :  { %p1694_p3 = por %p1693_p2, %p1692_p1 }
   0x7   :  { %p1695_p4 = pnand %p1694_p3, %p1688_p0 }
   0x9   :  { %1698 = shalt.err (!%p1695_p4)  }
   0xa   :  { %s1765_s23 = smov [#allocation5]  }
   0xb   :  { %19 = dma.vmem_to_smem %s17_s19, 16, %s1765_s23, [#allocation4] }
   0xc   :  { %1743 = dma.done.wait [#allocation4], 16 }
   0xd   :  { %1744 = vsyncadd [#allocation4], 4294967280 }
   0xe   :  { %23 = sfence }
   0xf   :  { %24 = vsyncpa [#allocation8], 0 }
  0x10   :  { %26 = vsyncpa [#allocation8 + $0x1], 0  ;;  %s1844_s0 = smov 0   ;;  %s1846_s24 = smov 0  }
  0x11   :  { %s1848_s10 = smov 0   ;;  %s1850_s25 = smov 0  }
  0x12 LB: > { %s1865_s26 = sadd.s32 4294967295, %s1763_s25   ;;  %s1532_s27 = sadd.s32 4294967294, %s1763_s25   ;;  %s1763_s25 = sphi %s1850_s25, %s2321_s25   ;;  %s1759_s10 = sphi %s1848_s10, %s2320_s10   ;;  %s1755_s24 = sphi %s1846_s24, %s2319_s24   ;;  %s1751_s0 = sphi %s1844_s0, %s2318_s0  }
  0x13   : > { %s1869_s28 = sadd.s32 1, %s1763_s25   ;;  %s254_s29 = sadd.s32 1, %s1759_s10 }
  0x14   : > { %s251_s30 = ssub.s32 %s1763_s25, %s1869_s28  ;;  %p264_p5 = scmp.ne.s32.totalorder %s1759_s10, %s1755_s24 }
  0x15   : > { %p252_p6 = scmp.eq.s32.totalorder %s251_s30, 0  ;;  %p265_p7 = scmp.eq.s32.totalorder %s1865_s26, 1 }
  0x16   : > { %p270_p8 = scmp.ne.s32.totalorder %s1755_s24, %s1751_s0  ;;  %p271_p9 = scmp.eq.s32.totalorder %s1532_s27, 1 }
  0x17   : > { %s1880_s12 = scalar_select %p252_p6, %s1759_s10, %s254_s29  }
  0x18   : > { %p1882_p10 = por %p265_p7, %p264_p5  ;;  %p1886_p11 = por %p271_p9, %p270_p8 }
  0x19   : > { %p1535_p12 = scmp.ge.s32.totalorder %s1763_s25, 1  ;;  %p324_p13 = scmp.lt.s32.totalorder %s1763_s25, 3 }
  0x1b   : > { %p325_p0 = pnand %p1535_p12, %p324_p13 }
  0x1c   : > { %p362_p1 = scmp.lt.s32.totalorder (!%p325_p0), %s1865_s26, 1  ;;  %s2299_s20 = smov (!%p325_p0), 1   ;;  %v1774_v6 = vmov (!%p325_p0), 0   ;;  %v380_v20 = vlaneseq (!%p325_p0)  ;;  %v1929_v21 = vld [vmem:[%s2283_s2] sm:$0xff] (!%p325_p0)  ;;  %v1934_v22 = vld [vmem:[%s2283_s2 + $0x8] sm:$0xff] (!%p325_p0)  ;;  %vm744_vm8 = vcmask (!%p325_p0), 1044480  }
  0x1d   : > { %328 = sbr.rel (%p325_p0) target bundleno = 1383 (0x567), region = 60  ;;  %s2305_s21 = smov (!%p325_p0), 16   ;;  %786 = vmatprep.mubr.bf16.mxu0 (!%p325_p0), %v1774_v6  ;;  %1662 = vset.pattern.permute.xlu1 (!%p325_p0), %v1774_v6  ;;  %v437_v24 = vrot.slane (!%p325_p0), %v1929_v21, 1  ;;  %v438_v25 = vrot.slane (!%p325_p0), %v1934_v22, 1  ;;  %v387_v26 = vrot.slane (!%p325_p0), %v1929_v21, 3  ;;  %v388_v28 = vrot.slane (!%p325_p0), %v1934_v22, 3 }
  0x1e   : > { %s2293_s22 = smov (!%p325_p0), 127   ;;  %s2303_s23 = smov (!%p325_p0), 15   ;;  %1661 = vset.pattern.permute.xlu0 (!%p325_p0), %v1774_v6  ;;  %930 = vmatprep.mubr.bf16.mxu1 (!%p325_p0), %v1774_v6  ;;  %v1937_v23 = vshrl.u32 (!%p325_p0), %v380_v20, 7  ;;  %v1943_v27 = vand.u32 (!%p325_p0), 127, %v380_v20  ;;  %v526_v29 = vrot.slane (!%p325_p0), %v1929_v21, 5  ;;  %v527_v30 = vrot.slane (!%p325_p0), %v1934_v22, 5 }
  0x1f   : > { %s1770_s27 = smov (!%p325_p0), 17   ;;  %s2295_s29 = smov (!%p325_p0), 113   ;;  %v1957_v34 = vmul.f32 (!%p325_p0), %v437_v24, %v1929_v21  ;;  %v1960_v35 = vmul.f32 (!%p325_p0), %v438_v25, %v1934_v22  ;;  %v1965_v36 = vmul.f32 (!%p325_p0), %v387_v26, %v1929_v21  ;;  %v1971_v37 = vmul.f32 (!%p325_p0), %v388_v28, %v1934_v22 }
  0x20   : > { %s1904_s30 = sld [smem:[#allocation5 + %s1865_s26]] (!%p325_p0)  ;;  %v1949_v31 = vsub.s32 (!%p325_p0), 0, %v1937_v23  ;;  %v414_v32 = vsub.s32 (!%p325_p0), 3, %v1937_v23  ;;  %v1953_v33 = vsub.s32 (!%p325_p0), 2, %v1937_v23  ;;  %vm467_vm0 = vcmp.lt.s32.totalorder (!%p325_p0), %v1943_v27, 1  ;;  %s2317_s18 = smov (!%p325_p0), 111  }
  0x21   : > { %vm409_vm1 = vcmp.lt.s32.totalorder (!%p325_p0), %v1943_v27, 16  ;;  %v1976_v38 = vmul.f32 (!%p325_p0), %v526_v29, %v1929_v21  ;;  %v1981_v39 = vmul.f32 (!%p325_p0), %v527_v30, %v1934_v22  ;;  %vm496_vm2 = vcmp.lt.s32.totalorder (!%p325_p0), %v1943_v27, 127 }
  0x22   : > { %v473_v40 = vrot.slane (!%p325_p0), %v1929_v21, %v1949_v31  ;;  %v477_v41 = vrot.slane (!%p325_p0), %v1934_v22, %v1949_v31  ;;  %vm434_vm3 = vcmp.lt.s32.totalorder (!%p325_p0), %v1943_v27, 15  ;;  %v415_v42 = vrot.slane (!%p325_p0), %v1929_v21, %v414_v32 }
  0x23   : > { %v419_v43 = vrot.slane (!%p325_p0), %v1934_v22, %v414_v32  ;;  %v502_v44 = vrot.slane (!%p325_p0), %v1929_v21, %v1953_v33  ;;  %v559_v45 = vsub.s32 (!%p325_p0), 5, %v1937_v23  ;;  %v506_v46 = vrot.slane (!%p325_p0), %v1934_v22, %v1953_v33 }
  0x24   : > { %s363_s15 = scalar_select %p362_p1, %s1865_s26, 1  ;;  %v446_v47 = vrot.slane %v1957_v34, %v1953_v33  ;;  %v450_v48 = vrot.slane %v1960_v35, %v1953_v33  ;;  %v396_v49 = vrot.slane %v1965_v36, %v1949_v31  ;;  %vm382_vm4 = vcmp.lt.s32.totalorder %v1943_v27, 17 }
  0x25   : > { %v400_v52 = vrot.slane %v1971_v37, %v1949_v31  ;;  %vm523_vm5 = vcmp.lt.s32.totalorder %v1943_v27, 113  ;;  %v535_v53 = vrot.slane %v1976_v38, %v1949_v31  ;;  %v539_v54 = vrot.slane %v1981_v39, %v1949_v31 }
  0x26   : > { %s1567_s16 = sshll.u32 %s363_s15, 2  ;;  %s2297_s15 = smov 112   ;;  %v2011_v59 = vrot.slane %v1929_v21, %v559_v45  ;;  %v2014_v60 = vrot.slane %v1934_v22, %v559_v45  ;;  %v585_v61 = vrot.slane %v1965_v36, %v1953_v33  ;;  %v589_v62 = vrot.slane %v1971_v37, %v1953_v33 }
  0x27   : > { %s366_s19 = scalar_lea.vmem %s2282_s1, %s1567_s16  ;;  %s2301_s16 = smov 111   ;;  %vm554_vm6 = vcmp.lt.s32.totalorder %v1943_v27, 112  ;;  %vm579_vm7 = vcmp.lt.s32.totalorder %v1943_v27, 111  ;;  %vm745_vm9 = vcmask 1045504   ;;  %vm725_vm10 = vcmask 220160  }
  0x28   : > { %v371_v1 = vld [vmem:[%s366_s19] sm:$0xf]  ;;  %s1568_s17 = smul.u32 48, %s1904_s30  ;;  %vm894_vm11 = vcmask 785408   ;;  %vm949_vm12 = vcmask 1042432   ;;  %vm2100_vm13 = vcmp.lt.s32.totalorder %v380_v20, 256 }
  0x29   : > { %v372_v2 = vunpack.c.l.bf16 %v371_v1  ;;  %v1248_v20 = vld [vmem:[%s2289_s8] sm:$0xff]  ;;  %vm1289_vm14 = vcmask 1043456   ;;  %vm1282_vm15 = vcmask 72704  }
  0x2b   : > { %v374_v3 = vcombine.high %v372_v2, %v372_v2  ;;  %491 = vst [vmem:[#allocation2 + $0x18] sm:$0x70] %v372_v2  ;;  %v488_v4 = vcombine.low %v372_v2, %v372_v2 }
  0x2d   : > { %v1631_v5 = vpack.i.bf16 %v374_v3, %v372_v2  ;;  %490 = vst [vmem:[#allocation2 + $0x10] sm:$0x70] %v488_v4 }
  0x2f   : > { %1632 = vrot.lane.b32.xlu1 %v1631_v5, %s2299_s20  ;;  %1622 = vrot.lane.b32.xlu0 %v1631_v5, %s2305_s21  ;;  %s1553_s20 = sshll.u32 %s1904_s30, 2  ;;  %s1552_s21 = sshll.u32 %s1904_s30, 1 }
  0x33   : > { %1637 = vrot.lane.b32.xlu1 %v1631_v5, %s2293_s22  ;;  %1627 = vrot.lane.b32.xlu0 %v1631_v5, %s2303_s23  ;;  %s1912_s22 = scalar_lea.vmem %s2284_s3, %s1568_s17  ;;  %s887_s17 = scalar_lea.vmem %s2287_s6, %s1553_s20 }
  0x34   : > { %v888_v19 = vld [vmem:[%s887_s17] sm:$0x7]  ;;  %s2312_s20 = smov 15   ;;  %s2316_s17 = smov 112  }
  0x37   : > { %1642 = vrot.lane.b32.xlu0 %v1631_v5, %s1770_s27  ;;  %1647 = vrot.lane.b32.xlu1 %v1631_v5, %s2295_s29  ;;  %s621_s29 = smul.u32 96, %s1904_s30  ;;  %s2309_s30 = smov 16  }
  0x3b   : > { %1652 = vrot.lane.b32.xlu0 %v1631_v5, %s2297_s15  ;;  %1657 = vrot.lane.b32.xlu1 %v1631_v5, %s2301_s16  ;;  %s622_s16 = scalar_lea.vmem %s2285_s4, %s621_s29  ;;  %s2314_s29 = smov 127  }
  0x3c   : > { %v624_v7 = vld [vmem:[%s622_s16 + $0x8] sm:$0xff]  ;;  %v623_v8 = vld [vmem:[%s622_s16] sm:$0xff]  ;;  %v625_v9 = vld [vmem:[%s622_s16 + $0x10] sm:$0xff]  ;;  %s2315_s15 = smov 113  }
  0x3d   : > { %v626_v10 = vld [vmem:[%s622_s16 + $0x18] sm:$0xff]  ;;  %v627_v11 = vld [vmem:[%s622_s16 + $0x20] sm:$0xff]  ;;  %v628_v12 = vld [vmem:[%s622_s16 + $0x28] sm:$0xff] }
  0x3e   : > { %v629_v13 = vld [vmem:[%s622_s16 + $0x30] sm:$0xff]  ;;  %v630_v14 = vld [vmem:[%s622_s16 + $0x38] sm:$0xff]  ;;  %v631_v15 = vld [vmem:[%s622_s16 + $0x40] sm:$0xff] }
  0x3f   : > { %642 = vperm.xlu1 %1662, %v624_v7   ;;  %637 = vperm.xlu0 %1661, %v623_v8   ;;  %v632_v16 = vld [vmem:[%s622_s16 + $0x48] sm:$0xff]  ;;  %v633_v17 = vld [vmem:[%s622_s16 + $0x50] sm:$0xff]  ;;  %v634_v18 = vld [vmem:[%s622_s16 + $0x58] sm:$0xff]  ;;  %s884_s16 = scalar_lea.vmem %s2286_s5, %s1552_s21 }
  0x43   : > { %647 = vperm.xlu1 %1662, %v625_v9   ;;  %652 = vperm.xlu0 %1661, %v626_v10  }
  0x47   : > { %657 = vperm.xlu1 %1662, %v627_v11   ;;  %662 = vperm.xlu0 %1661, %v628_v12  }
  0x4b   : > { %667 = vperm.xlu1 %1662, %v629_v13   ;;  %672 = vperm.xlu0 %1661, %v630_v14  }
  0x4f   : > { %677 = vperm.xlu1 %1662, %v631_v15   ;;  %682 = vperm.xlu0 %1661, %v632_v16  }
  0x53   : > { %687 = vperm.xlu1 %1662, %v633_v17   ;;  %692 = vperm.xlu0 %1661, %v634_v18  }
  0x57   : > { %891 = vperm.xlu1 %1662, %v888_v19  }
  0xa1   : > { %v1633_v50 = vpop.permute.xlu1 %1632  ;;  %v1623_v51 = vpop.permute.xlu0 %1622 }
  0xa2   : > { %v1635_v55 = vunpack.i.h.bf16 %v1633_v50  ;;  %v1634_v56 = vunpack.i.l.bf16 %v1633_v50  ;;  %v1625_v57 = vunpack.i.h.bf16 %v1623_v51  ;;  %v1624_v58 = vunpack.i.l.bf16 %v1623_v51 }
  0xa4   : > { %v468_v63 = vsel %vm467_vm0, %v1634_v56, %v1635_v55  ;;  %v469_v0 = vsel %vm467_vm0, %v1635_v55, %v1634_v56  ;;  %v410_v1 = vsel %vm409_vm1, %v1624_v58, %v1625_v57  ;;  %v411_v2 = vsel %vm409_vm1, %v1625_v57, %v1624_v58 }
  0xa5   : > { %v478_v3 = vmul.f32 %v473_v40, %v469_v0  ;;  %v479_v4 = vmul.f32 %v477_v41, %v468_v63  ;;  %v420_v5 = vmul.f32 %v415_v42, %v411_v2  ;;  %v421_v7 = vmul.f32 %v419_v43, %v410_v1  ;;  %v1638_v8 = vpop.permute.xlu1 %1637  ;;  %v1628_v9 = vpop.permute.xlu0 %1627 }
  0xa6   : > { %v1640_v10 = vunpack.i.h.bf16 %v1638_v8  ;;  %v1639_v11 = vunpack.i.l.bf16 %v1638_v8  ;;  %v1630_v12 = vunpack.i.h.bf16 %v1628_v9  ;;  %v1629_v13 = vunpack.i.l.bf16 %v1628_v9 }
  0xa7   : > { %v482_v14 = vrot.slane %v478_v3, 7  ;;  %v483_v15 = vrot.slane %v479_v4, 7  ;;  %v424_v16 = vrot.slane %v420_v5, 5  ;;  %v425_v17 = vrot.slane %v421_v7, 5 }
  0xa8   : > { %v497_v18 = vsel %vm496_vm2, %v1639_v11, %v1640_v10  ;;  %v498_v19 = vsel %vm496_vm2, %v1640_v10, %v1639_v11  ;;  %v435_v24 = vsel %vm434_vm3, %v1629_v13, %v1630_v12  ;;  %v436_v25 = vsel %vm434_vm3, %v1630_v12, %v1629_v13 }
  0xa9   : > { %486 = vst [vmem:[#allocation2 + $0x10] sm:$0xe] %v482_v14  ;;  %487 = vst [vmem:[#allocation2 + $0x18] sm:$0xe] %v483_v15  ;;  %v507_v32 = vmul.f32 %v502_v44, %v497_v18  ;;  %v508_v40 = vmul.f32 %v506_v46, %v498_v19  ;;  %v451_v41 = vmul.f32 %v446_v47, %v436_v25  ;;  %v1643_v43 = vpop.permute.xlu0 %1642  ;;  %v1648_v45 = vpop.permute.xlu1 %1647 }
  0xaa   : > { %428 = vst [vmem:[#allocation2] sm:$0x38] %v424_v16  ;;  %429 = vst [vmem:[#allocation2 + $0x8] sm:$0x38] %v425_v17  ;;  %v452_v42 = vmul.f32 %v450_v48, %v435_v24  ;;  %v1645_v50 = vunpack.i.h.bf16 %v1643_v43  ;;  %v1644_v51 = vunpack.i.l.bf16 %v1643_v43  ;;  %v1650_v55 = vunpack.i.h.bf16 %v1648_v45 }
  0xab   : > { %v1649_v56 = vunpack.i.l.bf16 %v1648_v45  ;;  %v511_v57 = vrot.slane %v507_v32, 1  ;;  %v512_v58 = vrot.slane %v508_v40, 1  ;;  %v455_v63 = vrot.slane %v451_v41, 2 }
  0xac   : > { %v456_v0 = vrot.slane %v452_v42, 2  ;;  %v383_v1 = vsel %vm382_vm4, %v1644_v51, %v1645_v50  ;;  %v384_v2 = vsel %vm382_vm4, %v1645_v50, %v1644_v51 }
  0xad   : > { %v524_v44 = vsel %vm523_vm5, %v1649_v56, %v1650_v55  ;;  %v525_v46 = vsel %vm523_vm5, %v1650_v55, %v1649_v56  ;;  %515 = vst [vmem:[#allocation2 + $0x20] ss:$-12 sps:$4 sm:$0x83] %v511_v57   ;;  %516 = vst [vmem:[#allocation2 + $0x28] ss:$-12 sps:$4 sm:$0x83] %v512_v58   ;;  %v401_v47 = vmul.f32 %v396_v49, %v384_v2  ;;  %v1653_v5 = vpop.permute.xlu0 %1652  ;;  %v1658_v7 = vpop.permute.xlu1 %1657 }
  0xae   : > { %459 = vst [vmem:[#allocation2 + $0x10] ss:$-12 sps:$4 sm:$0xc1] %v455_v63   ;;  %460 = vst [vmem:[#allocation2 + $0x18] ss:$-12 sps:$4 sm:$0xc1] %v456_v0   ;;  %v402_v48 = vmul.f32 %v400_v52, %v383_v1  ;;  %v540_v3 = vmul.f32 %v535_v53, %v524_v44  ;;  %v541_v4 = vmul.f32 %v539_v54, %v525_v46  ;;  %v1655_v8 = vunpack.i.h.bf16 %v1653_v5 }
  0xaf   : > { %v1654_v9 = vunpack.i.l.bf16 %v1653_v5  ;;  %v1660_v10 = vunpack.i.h.bf16 %v1658_v7  ;;  %v1659_v11 = vunpack.i.l.bf16 %v1658_v7  ;;  %403 = vst [vmem:[#allocation2] sm:$0x7] %v401_v47  ;;  %v1663_v57 = vld [vmem:[%s1912_s22] sm:$0xff]   ;;  %v1664_v58 = vld [vmem:[%s1912_s22 + $0x8] sm:$0xff]   ;;  %v1665_v63 = vld [vmem:[%s1912_s22 + $0x10] sm:$0xff]  }
  0xb0   : > { %404 = vst [vmem:[#allocation2 + $0x8] sm:$0x7] %v402_v48  ;;  %v544_v12 = vrot.slane %v540_v3, 6  ;;  %v545_v13 = vrot.slane %v541_v4, 6  ;;  %v1666_v0 = vld [vmem:[%s1912_s22 + $0x18] sm:$0xff]   ;;  %v1667_v1 = vld [vmem:[%s1912_s22 + $0x20] sm:$0xff]  }
  0xb1   : > { %v555_v14 = vsel %vm554_vm6, %v1654_v9, %v1655_v8  ;;  %v556_v49 = vsel %vm554_vm6, %v1655_v8, %v1654_v9  ;;  %v580_v52 = vsel %vm579_vm7, %v1659_v11, %v1660_v10  ;;  %v581_v53 = vsel %vm579_vm7, %v1660_v10, %v1659_v11  ;;  %v1668_v2 = vld [vmem:[%s1912_s22 + $0x28] sm:$0xff]   ;;  %s359_s22 = sand.u32 1, %s1755_s24  }
  0xb2   : > { %548 = vst [vmem:[#allocation2 + $0x20] sm:$0x1c] %v544_v12  ;;  %549 = vst [vmem:[#allocation2 + $0x28] sm:$0x1c] %v545_v13  ;;  %v565_v54 = vmul.f32 %v2011_v59, %v555_v14  ;;  %v566_v15 = vmul.f32 %v2014_v60, %v556_v49  ;;  %v590_v16 = vmul.f32 %v585_v61, %v580_v52  ;;  %v1775_v61 = vmov 65535   ;;  %s1536_s23 = sshll.u32 %s359_s22, 1 }
  0xb3   : > { %v591_v17 = vmul.f32 %v589_v62, %v581_v53  ;;  %v746_v33 = vsel %vm744_vm8, 4294967295, %v1775_v61  ;;  %v1290_v27 = vsel %vm1289_vm14, 4294967295, %v1775_v61  ;;  %v1670_v61 = vld [vmem:[%s2288_s7 + $0x8] sm:$0xff]  }
  0xb4   : > { %v569_v18 = vrot.slane %v565_v54, 3  ;;  %v570_v19 = vrot.slane %v566_v15, 3  ;;  %592 = vst [vmem:[#allocation2 + $0x30] sm:$0x7] %v590_v16  ;;  %v747_v43 = vsel %vm745_vm9, %v746_v33, 0 }
  0xb5   : > { %593 = vst [vmem:[#allocation2 + $0x38] sm:$0x7] %v591_v17  ;;  %v597_v24 = vld [vmem:[#allocation2 + $0x18] sm:$0xff]  ;;  %v596_v59 = vld [vmem:[#allocation2 + $0x10] sm:$0xff] }
  0xb6   : > { %573 = vst [vmem:[#allocation2 + $0x20] sm:$0xe0] %v569_v18  ;;  %574 = vst [vmem:[#allocation2 + $0x28] sm:$0xe0] %v570_v19  ;;  %v594_v32 = vld [vmem:[#allocation2] sm:$0xff] }
  0xb7   : > { %v595_v25 = vld [vmem:[#allocation2 + $0x8] sm:$0xff]  ;;  %v602_v40 = vpack.c.bf16 %v596_v59, %v594_v32 }
  0xb8   : > { %v603_v60 = vpack.c.bf16 %v597_v24, %v595_v25 }
  0xba   : > { %754 = vmatprep.subr.bf16.mxu0 %v603_v60 }
  0xbb   : > { %755 = vmatpush1.bf16.msra.mxu0 %v602_v40  ;;  %v600_v41 = vld [vmem:[#allocation2 + $0x30] sm:$0x7] }
  0xbc   : > { %v601_v62 = vld [vmem:[#allocation2 + $0x38] sm:$0x7] }
  0xbd   : > { %v599_v42 = vld [vmem:[#allocation2 + $0x28] sm:$0xff]  ;;  %v598_v45 = vld [vmem:[#allocation2 + $0x20] sm:$0xff] }
  0xbe   : > { %v605_v50 = vpack.c.bf16 %v601_v62, %v599_v42  ;;  %v604_v51 = vpack.c.bf16 %v600_v41, %v598_v45  ;;  %v638_v44 = vpop.permute.xlu0 %637  ;;  %v643_v3 = vpop.permute.xlu1 %642 }
  0xc0   : > { %v752_v55 = vand.u32 %v747_v43, %v605_v50  ;;  %v749_v56 = vand.u32 %v747_v43, %v604_v51 }
  0xc2   : > { %756 = vmatprep.subr.bf16.mxu0 %v752_v55  ;;  %v648_v49 = vpop.permute.xlu1 %647  ;;  %v653_v16 = vpop.permute.xlu0 %652 }
  0xc3   : > { %757 = vmatpush1.bf16.msra.mxu0 %v749_v56 }
  0xc6   : > { %1546 = vmatmul.mubr.msk.bf16.vlgmr.msra.gmra.mrb[0].mxu0 %vm725_vm10, %v1663_v57  ;;  %v658_v62 = vpop.permute.xlu1 %657  ;;  %v663_v50 = vpop.permute.xlu0 %662 }
  0xc7   : > { %796 = vmatprep.mubr.bf16.mxu0 %v1774_v6 }
  0xce   : > { %1547 = vmatmul.mubr.msk.bf16.gmra.mrb[4].mxu0 %vm725_vm10, %v1664_v58 }
  0xcf   : > { %806 = vmatprep.mubr.bf16.mxu0 %v1774_v6 }
  0xd6   : > { %1548 = vmatmul.mubr.msk.bf16.gmra.mrb[8].mxu0 %vm725_vm10, %v1665_v63 }
  0xd7   : > { %816 = vmatprep.mubr.bf16.mxu0 %v1774_v6 }
  0xde   : > { %1549 = vmatmul.mubr.msk.bf16.gmra.mrb[12].mxu0 %vm725_vm10, %v1666_v0 }
  0xdf   : > { %826 = vmatprep.mubr.bf16.mxu0 %v1774_v6 }
  0xe6   : > { %1550 = vmatmul.mubr.msk.bf16.gmra.mrb[16].mxu0 %vm725_vm10, %v1667_v1 }
  0xe7   : > { %836 = vmatprep.mubr.bf16.mxu0 %v1774_v6 }
  0xee   : > { %1551 = vmatmul.mubr.msk.bf16.gmra.mrb[20].mxu0 %vm725_vm10, %v1668_v2 }
 0x199   : > { %v788_v46 = vpop.f32.mrb[0].mxu0 }
 0x19a   : > { %v789_v47 = vadd.f32 %v788_v46, %v638_v44  ;;  %v790_v48 = vpop.f32.mrb[1].mxu0  ;;  %v668_v46 = vpop.permute.xlu1 %667 }
 0x19b   : > { %v791_v4 = vadd.f32 %v790_v48, %v638_v44  ;;  %v792_v5 = vpop.f32.mrb[2].mxu0 }
 0x19c   : > { %v793_v7 = vadd.f32 %v792_v5, %v643_v3  ;;  %v794_v8 = vpop.f32.mrb[3].mxu0  ;;  %v847_v10 = vmax.f32 %v789_v47, 0.0  ;;  %v673_v5 = vpop.permute.xlu0 %672 }
 0x19d   : > { %v795_v9 = vadd.f32 %v794_v8, %v643_v3  ;;  %v848_v12 = vmax.f32 %v791_v4, 0.0 }
 0x19e   : > { %v849_v11 = vmax.f32 %v793_v7, 0.0 }
 0x19f   : > { %v850_v13 = vmax.f32 %v795_v9, 0.0 }
 0x1a0   : > { %v871_v14 = vpack.c.bf16 %v849_v11, %v847_v10 }
 0x1a1   : > { %v798_v52 = vpop.f32.mrb[4].mxu0  ;;  %v872_v53 = vpack.c.bf16 %v850_v13, %v848_v12 }
 0x1a2   : > { %v799_v54 = vadd.f32 %v798_v52, %v648_v49  ;;  %v800_v15 = vpop.f32.mrb[5].mxu0 }
 0x1a3   : > { %v801_v17 = vadd.f32 %v800_v15, %v648_v49  ;;  %v802_v18 = vpop.f32.mrb[6].mxu0  ;;  %898 = vmatprep.subr.bf16.mxu1 %v872_v53  ;;  %v678_v53 = vpop.permute.xlu1 %677 }
 0x1a4   : > { %v803_v19 = vadd.f32 %v802_v18, %v653_v16  ;;  %v804_v24 = vpop.f32.mrb[7].mxu0  ;;  %899 = vmatpush1.bf16.msra.mxu1 %v871_v14  ;;  %v851_v32 = vmax.f32 %v799_v54, 0.0  ;;  %v683_v18 = vpop.permute.xlu0 %682 }
 0x1a5   : > { %v805_v25 = vadd.f32 %v804_v24, %v653_v16  ;;  %v852_v60 = vmax.f32 %v801_v17, 0.0 }
 0x1a6   : > { %v853_v59 = vmax.f32 %v803_v19, 0.0 }
 0x1a7   : > { %v854_v40 = vmax.f32 %v805_v25, 0.0 }
 0x1a8   : > { %v873_v33 = vpack.c.bf16 %v853_v59, %v851_v32 }
 0x1a9   : > { %v874_v41 = vpack.c.bf16 %v854_v40, %v852_v60  ;;  %v808_v42 = vpop.f32.mrb[8].mxu0 }
 0x1aa   : > { %v809_v43 = vadd.f32 %v808_v42, %v658_v62  ;;  %v810_v45 = vpop.f32.mrb[9].mxu0  ;;  %v688_v42 = vpop.permute.xlu1 %687 }
 0x1ab   : > { %v811_v51 = vadd.f32 %v810_v45, %v658_v62  ;;  %v812_v55 = vpop.f32.mrb[10].mxu0  ;;  %900 = vmatprep.subr.bf16.mxu1 %v874_v41 }
 0x1ac   : > { %v813_v56 = vadd.f32 %v812_v55, %v663_v50  ;;  %v814_v57 = vpop.f32.mrb[11].mxu0  ;;  %901 = vmatpush1.bf16.msra.mxu1 %v873_v33  ;;  %v855_v63 = vmax.f32 %v809_v43, 0.0  ;;  %v693_v55 = vpop.permute.xlu0 %692 }
 0x1ad   : > { %v815_v58 = vadd.f32 %v814_v57, %v663_v50  ;;  %v856_v1 = vmax.f32 %v811_v51, 0.0 }
 0x1ae   : > { %v857_v0 = vmax.f32 %v813_v56, 0.0 }
 0x1af   : > { %v858_v2 = vmax.f32 %v815_v58, 0.0 }
 0x1b0   : > { %v875_v44 = vpack.c.bf16 %v857_v0, %v855_v63 }
 0x1b1   : > { %v876_v47 = vpack.c.bf16 %v858_v2, %v856_v1  ;;  %v818_v48 = vpop.f32.mrb[12].mxu0 }
 0x1b2   : > { %v819_v3 = vadd.f32 %v818_v48, %v668_v46  ;;  %v820_v4 = vpop.f32.mrb[13].mxu0 }
 0x1b3   : > { %v821_v7 = vadd.f32 %v820_v4, %v668_v46  ;;  %v822_v8 = vpop.f32.mrb[14].mxu0  ;;  %902 = vmatprep.subr.bf16.mxu1 %v876_v47  ;;  %v892_v4 = vpop.permute.xlu1 %891 }
 0x1b4   : > { %v823_v9 = vadd.f32 %v822_v8, %v673_v5  ;;  %v824_v10 = vpop.f32.mrb[15].mxu0  ;;  %903 = vmatpush1.bf16.msra.mxu1 %v875_v44  ;;  %v859_v12 = vmax.f32 %v819_v3, 0.0  ;;  %v885_v3 = vld [vmem:[%s884_s16] sm:$0x3]  ;;  %s1569_s16 = sshll.u32 %s1865_s26, 5  ;;  %s1451_s26 = scalar_lea.sflag [#allocation8], %s359_s22 }
 0x1b5   : > { %v825_v11 = vadd.f32 %v824_v10, %v673_v5  ;;  %v860_v14 = vmax.f32 %v821_v7, 0.0 }
 0x1b6   : > { %v861_v13 = vmax.f32 %v823_v9, 0.0 }
 0x1b7   : > { %v862_v49 = vmax.f32 %v825_v11, 0.0 }
 0x1b8   : > { %v877_v52 = vpack.c.bf16 %v861_v13, %v859_v12 }
 0x1b9   : > { %v878_v54 = vpack.c.bf16 %v862_v49, %v860_v14  ;;  %v828_v15 = vpop.f32.mrb[16].mxu0 }
 0x1ba   : > { %v829_v16 = vadd.f32 %v828_v15, %v678_v53  ;;  %v830_v17 = vpop.f32.mrb[17].mxu0 }
 0x1bb   : > { %v831_v19 = vadd.f32 %v830_v17, %v678_v53  ;;  %v832_v24 = vpop.f32.mrb[18].mxu0  ;;  %904 = vmatprep.subr.bf16.mxu1 %v878_v54 }
 0x1bc   : > { %v833_v25 = vadd.f32 %v832_v24, %v683_v18  ;;  %v834_v32 = vpop.f32.mrb[19].mxu0  ;;  %905 = vmatpush1.bf16.msra.mxu1 %v877_v52  ;;  %v863_v60 = vmax.f32 %v829_v16, 0.0 }
 0x1bd   : > { %v835_v59 = vadd.f32 %v834_v32, %v683_v18  ;;  %v864_v33 = vmax.f32 %v831_v19, 0.0 }
 0x1be   : > { %v865_v40 = vmax.f32 %v833_v25, 0.0 }
 0x1bf   : > { %v866_v62 = vmax.f32 %v835_v59, 0.0 }
 0x1c0   : > { %v879_v41 = vpack.c.bf16 %v865_v40, %v863_v60  ;;  %v1776_v40 = vmov 1966171168  }
 0x1c1   : > { %v880_v43 = vpack.c.bf16 %v866_v62, %v864_v33  ;;  %v838_v45 = vpop.f32.mrb[20].mxu0  ;;  %v978_v33 = vunpack.c.l.s4 %v1776_v40 }
 0x1c2   : > { %v839_v50 = vadd.f32 %v838_v45, %v688_v42  ;;  %v840_v51 = vpop.f32.mrb[21].mxu0 }
 0x1c3   : > { %v841_v56 = vadd.f32 %v840_v51, %v688_v42  ;;  %v842_v57 = vpop.f32.mrb[22].mxu0  ;;  %906 = vmatprep.subr.bf16.mxu1 %v880_v43  ;;  %v979_v45 = vunpack.c.0.s8 %v978_v33  ;;  %v1118_v33 = vrot.slane %v1929_v21, 2 }
 0x1c4   : > { %v843_v58 = vadd.f32 %v842_v57, %v693_v55  ;;  %v844_v63 = vpop.f32.mrb[23].mxu0  ;;  %907 = vmatpush1.bf16.msra.mxu1 %v879_v41  ;;  %v867_v1 = vmax.f32 %v839_v50, 0.0 }
 0x1c5   : > { %v845_v0 = vadd.f32 %v844_v63, %v693_v55  ;;  %v868_v44 = vmax.f32 %v841_v56, 0.0  ;;  %v2093_v57 = vsub.s32 %v979_v45, %v1937_v23 }
 0x1c6   : > { %v869_v2 = vmax.f32 %v843_v58, 0.0 }
 0x1c7   : > { %v870_v46 = vmax.f32 %v845_v0, 0.0 }
 0x1c8   : > { %v881_v47 = vpack.c.bf16 %v869_v2, %v867_v1  ;;  %v1249_v2 = vld [vmem:[%s2289_s8 + $0x8] sm:$0xff] }
 0x1c9   : > { %v882_v48 = vpack.c.bf16 %v870_v46, %v868_v44  ;;  %v1250_v44 = vld [vmem:[%s2289_s8 + $0x10] sm:$0xff]  ;;  %v1251_v46 = vld [vmem:[%s2289_s8 + $0x18] sm:$0xff] }
 0x1cb   : > { %908 = vmatprep.subr.bf16.mxu1 %v882_v48 }
 0x1cc   : > { %909 = vmatpush1.bf16.msra.mxu1 %v881_v47  ;;  %v1364_v47 = vld [vmem:[#allocation6] sm:$0x1] }
 0x1cf   : > { %1554 = vmatmul.mubr.msk.bf16.vlgmr.msra.gmra.mrb[0].mxu1 %vm894_vm11, %v885_v3 }
 0x1d0   : > { %1330 = vmatprep.mubr.bf16.mxu1 %v1774_v6 }
 0x2a2   : > { %v932_v5 = vpop.f32.mrb[0].mxu1 }
 0x2a3   : > { %v933_v7 = vadd.f32 %v932_v5, %v892_v4  ;;  %v934_v8 = vpop.f32.mrb[1].mxu1 }
 0x2a4   : > { %v935_v9 = vadd.f32 %v934_v8, %v892_v4  ;;  %v936_v10 = vpop.f32.mrb[2].mxu1 }
 0x2a5   : > { %v939_v11 = vsub.f32 0.0, %v933_v7  ;;  %v937_v12 = vpop.f32.mrb[3].mxu1 }
 0x2a6   : > { %v940_v13 = vsub.f32 0.0, %v935_v9 }
 0x2a7   : > { %v941_v14 = vmul.f32 1.442695, %v939_v11 }
 0x2a8   : > { %v943_v49 = vmul.f32 1.442695, %v940_v13 }
 0x2a9   : > { %1671 = vpow2.f32 %v941_v14  ;;  %v1035_v14 = vrot.slane %v1957_v34, 2 }
 0x2aa   : > { %1673 = vpow2.f32 %v943_v49 }
 0x2b3   : > { %v1672_v52 = vpop.eup %1671 }
 0x2b4   : > { %v1674_v53 = vpop.eup %1673  ;;  %v945_v54 = vadd.f32 1.0, %v1672_v52 }
 0x2b5   : > { %v946_v15 = vadd.f32 1.0, %v1674_v53 }
 0x2b6   : > { %1675 = vrcp.f32 %v945_v54  ;;  %v1036_v54 = vrot.slane %v1960_v35, 2 }
 0x2b7   : > { %1677 = vrcp.f32 %v946_v15 }
 0x2c0   : > { %v1676_v16 = vpop.eup %1675 }
 0x2c1   : > { %v1678_v17 = vpop.eup %1677  ;;  %v950_v18 = vsel %vm949_vm12, %v1676_v16, 0.0 }
 0x2c2   : > { %v951_v19 = vrot.slane %v950_v18, 4  ;;  %v957_v24 = vsel %vm949_vm12, %v1678_v17, 0.0 }
 0x2c3   : > { %v958_v25 = vrot.slane %v957_v24, 4 }
 0x2c4   : > { %v952_v32 = vadd.f32 %v951_v19, %v950_v18 }
 0x2c5   : > { %v959_v59 = vadd.f32 %v958_v25, %v957_v24 }
 0x2c6   : > { %v953_v60 = vrot.slane %v952_v32, 2 }
 0x2c7   : > { %v960_v62 = vrot.slane %v959_v59, 2 }
 0x2c8   : > { %v954_v41 = vadd.f32 %v953_v60, %v952_v32 }
 0x2c9   : > { %v961_v42 = vadd.f32 %v960_v62, %v959_v59 }
 0x2ca   : > { %v955_v43 = vrot.slane %v954_v41, 1 }
 0x2cb   : > { %v962_v50 = vrot.slane %v961_v42, 1 }
 0x2cc   : > { %v956_v51 = vadd.f32 %v955_v43, %v954_v41  ;;  %v1119_v43 = vrot.slane %v1934_v22, 2 }
 0x2cd   : > { %v963_v55 = vadd.f32 %v962_v50, %v961_v42 }
 0x2ce   : > { %v964_v56 = vmul.f32 0.33333334, %v956_v51 }
 0x2cf   : > { %v965_v58 = vmul.f32 0.33333334, %v963_v55 }
 0x2d0   : > { %966 = vrot.lane.b32.xlu0 %v964_v56, %s1770_s27 }
 0x2d1   : > { %968 = vrot.lane.b32.xlu1 %v965_v58, %s1770_s27  ;;  %v1093_v63 = vcombine.low %v964_v56, %v965_v58  ;;  %s2313_s27 = smov 1  }
 0x2d3   : > { %v1100_v0 = vrot.slane %v1093_v63, %v2093_v57 }
 0x2d4   : > { %998 = vrot.lane.b32.xlu0 %v964_v56, %s2309_s30 }
 0x2d5   : > { %1000 = vrot.lane.b32.xlu1 %v965_v58, %s2309_s30  ;;  %v1107_v23 = vrot.slane %v1100_v0, %v2093_v57  ;;  %s361_s30 = scalar_lea.vmem [#allocation7], %s1536_s23 }
 0x2d7   : > { %1110 = vst.msk [vmem:[#allocation3 + $0x4] ss:$8 sm:$0x3] %vm2100_vm13, %v1107_v23 }
 0x2d8   : > { %1027 = vrot.lane.b32.xlu0 %v964_v56, %s2312_s20 }
 0x2d9   : > { %1029 = vrot.lane.b32.xlu1 %v965_v58, %s2312_s20  ;;  %s1465_s20 = sshll.u32 %s361_s30, 4  ;;  %s2239_s20 = int_to_ptr.vmem [resolvable:$true] %s1465_s20 }
 0x2dc   : > { %1062 = vrot.lane.b32.xlu0 %v964_v56, %s2313_s27 }
 0x2dd   : > { %1064 = vrot.lane.b32.xlu1 %v965_v58, %s2313_s27 }
 0x2e0   : > { %1112 = vrot.lane.b32.xlu0 %v964_v56, %s2314_s29 }
 0x2e1   : > { %1114 = vrot.lane.b32.xlu1 %v965_v58, %s2314_s29 }
 0x2e4   : > { %1145 = vrot.lane.b32.xlu0 %v964_v56, %s2315_s15 }
 0x2e5   : > { %1147 = vrot.lane.b32.xlu1 %v965_v58, %s2315_s15  ;;  %s2237_s15 = scalar_lea.hbm %s2291_s11, %s1569_s16 }
 0x2e8   : > { %1174 = vrot.lane.b32.xlu0 %v964_v56, %s2316_s17 }
 0x2e9   : > { %1176 = vrot.lane.b32.xlu1 %v965_v58, %s2316_s17  ;;  %s1699_s17 = scalar_lea.vmem %s2239_s20, 32 }
 0x2ea   : > { %p1700_p2 = scmp.ne.s32.totalorder %s2239_s20, %s1699_s17 }
 0x2ec   : > { %1203 = vrot.lane.b32.xlu0 %v964_v56, %s2317_s18  ;;  %p1701_p3 = pnand %p1700_p2, %p1882_p10 }
 0x2ed   : > { %1205 = vrot.lane.b32.xlu1 %v965_v58, %s2317_s18  ;;  %s1777_s18 = smov [#allocation7]  }
 0x2ee   : > { %p1702_p4 = pneg %p1701_p3  ;;  %s1703_s19 = sshll.u32 %s1777_s18, 4  ;;  %s1704_s19 = int_to_ptr.vmem [resolvable:$false] %s1703_s19 }
 0x2ef   : > { %s1705_s21 = scalar_lea.vmem %s1704_s19, 64  ;;  %p1706_p5 = scmp.lt.s32.totalorder %s2239_s20, %s1704_s19 }
 0x2f0   : > { %1254 = vperm.xlu0 %1661, %v1248_v20   ;;  %p1707_p6 = scmp.lt.s32.totalorder %s1705_s21, %s1699_s17 }
 0x2f1   : > { %1259 = vperm.xlu1 %1662, %v1249_v2  }
 0x2f2   : > { %p1708_p7 = por %p1707_p6, %p1706_p5 }
 0x2f4   : > { %1264 = vperm.xlu0 %1661, %v1250_v44   ;;  %p1709_p8 = pnand %p1708_p7, %p1702_p4 }
 0x2f5   : > { %1269 = vperm.xlu1 %1662, %v1251_v46  }
 0x2f8   : > { %1367 = vperm.xlu0 %1661, %v1364_v47  }
 0x342   : > { %v967_v48 = vpop.permute.xlu0 %966 }
 0x343   : > { %v969_v3 = vpop.permute.xlu1 %968 }
 0x344   : > { %v970_v4 = vsel %vm382_vm4, %v967_v48, %v969_v3  ;;  %v971_v5 = vsel %vm382_vm4, %v969_v3, %v967_v48 }
 0x345   : > { %v972_v7 = vmul.f32 %v971_v5, %v1965_v36  ;;  %v973_v8 = vmul.f32 %v970_v4, %v1971_v37 }
 0x346   : > { %v999_v9 = vpop.permute.xlu0 %998 }
 0x347   : > { %v976_v10 = vcombine.low %v972_v7, %v973_v8  ;;  %v1001_v11 = vpop.permute.xlu1 %1000 }
 0x348   : > { %v1002_v12 = vsel %vm409_vm1, %v999_v9, %v1001_v11  ;;  %v1003_v13 = vsel %vm409_vm1, %v1001_v11, %v999_v9 }
 0x349   : > { %v983_v49 = vrot.slane %v976_v10, %v2093_v57  ;;  %v1004_v52 = vmul.f32 %v1003_v13, %v387_v26  ;;  %v1005_v53 = vmul.f32 %v1002_v12, %v388_v28  ;;  %v1211_v13 = vrot.slane %v1965_v36, 2 }
 0x34a   : > { %v1028_v15 = vpop.permute.xlu0 %1027 }
 0x34b   : > { %v990_v16 = vrot.slane %v983_v49, %v2093_v57  ;;  %v1008_v17 = vcombine.low %v1004_v52, %v1005_v53  ;;  %v1030_v18 = vpop.permute.xlu1 %1029  ;;  %v1212_v49 = vrot.slane %v1971_v37, 2 }
 0x34c   : > { %v1031_v19 = vsel %vm434_vm3, %v1028_v15, %v1030_v18  ;;  %v1032_v34 = vsel %vm434_vm3, %v1030_v18, %v1028_v15 }
 0x34d   : > { %996 = vst.msk [vmem:[#allocation3] ss:$8 sm:$0x3] %vm2100_vm13, %v990_v16  ;;  %v1015_v26 = vrot.slane %v1008_v17, %v2093_v57  ;;  %v1039_v24 = vmul.f32 %v1035_v14, %v1032_v34  ;;  %v1040_v28 = vmul.f32 %v1036_v54, %v1031_v19 }
 0x34e   : > { %v1063_v25 = vpop.permute.xlu0 %1062 }
 0x34f   : > { %v1022_v35 = vrot.slane %v1015_v26, %v2093_v57  ;;  %v1043_v32 = vcombine.low %v1039_v24, %v1040_v28  ;;  %v1065_v59 = vpop.permute.xlu1 %1064  ;;  %v1291_v28 = vsel %vm744_vm8, %v1290_v27, 0 }
 0x350   : > { %v1066_v60 = vsel %vm467_vm0, %v1063_v25, %v1065_v59  ;;  %v1067_v40 = vsel %vm467_vm0, %v1065_v59, %v1063_v25  ;;  %vm1374_vm0 = vcmask 261120  }
 0x351   : > { %1025 = vst.msk [vmem:[#allocation3 + $0x1] ss:$8 sm:$0x3] %vm2100_vm13, %v1022_v35  ;;  %v1050_v62 = vrot.slane %v1043_v32, %v2093_v57  ;;  %v1068_v41 = vmul.f32 %v1067_v40, %v1929_v21  ;;  %v1069_v42 = vmul.f32 %v1066_v60, %v1934_v22  ;;  %v1669_v60 = vld [vmem:[%s2288_s7] sm:$0xff]  }
 0x352   : > { %v1113_v45 = vpop.permute.xlu0 %1112 }
 0x353   : > { %v1057_v50 = vrot.slane %v1050_v62, %v2093_v57  ;;  %v1072_v51 = vcombine.low %v1068_v41, %v1069_v42  ;;  %v1115_v55 = vpop.permute.xlu1 %1114 }
 0x354   : > { %v1116_v56 = vsel %vm496_vm2, %v1113_v45, %v1115_v55  ;;  %v1117_v58 = vsel %vm496_vm2, %v1115_v55, %v1113_v45 }
 0x355   : > { %1060 = vst.msk [vmem:[#allocation3 + $0x2] ss:$8 sm:$0x3] %vm2100_vm13, %v1057_v50  ;;  %v1079_v63 = vrot.slane %v1072_v51, %v2093_v57  ;;  %v1122_v0 = vmul.f32 %v1118_v33, %v1116_v56  ;;  %v1123_v23 = vmul.f32 %v1119_v43, %v1117_v58 }
 0x356   : > { %v1146_v20 = vpop.permute.xlu0 %1145 }
 0x357   : > { %v1086_v2 = vrot.slane %v1079_v63, %v2093_v57  ;;  %v1126_v44 = vcombine.low %v1122_v0, %v1123_v23  ;;  %v1148_v46 = vpop.permute.xlu1 %1147 }
 0x358   : > { %v1149_v47 = vsel %vm523_vm5, %v1146_v20, %v1148_v46  ;;  %v1150_v48 = vsel %vm523_vm5, %v1148_v46, %v1146_v20 }
 0x359   : > { %1089 = vst.msk [vmem:[#allocation3 + $0x3] ss:$8 sm:$0x3] %vm2100_vm13, %v1086_v2  ;;  %v1133_v3 = vrot.slane %v1126_v44, %v2093_v57  ;;  %v1151_v4 = vmul.f32 %v1149_v47, %v1976_v38  ;;  %v1152_v5 = vmul.f32 %v1150_v48, %v1981_v39 }
 0x35a   : > { %v1175_v7 = vpop.permute.xlu0 %1174 }
 0x35b   : > { %v1140_v8 = vrot.slane %v1133_v3, %v2093_v57  ;;  %v1155_v9 = vcombine.low %v1151_v4, %v1152_v5  ;;  %v1177_v10 = vpop.permute.xlu1 %1176 }
 0x35c   : > { %v1178_v11 = vsel %vm554_vm6, %v1175_v7, %v1177_v10  ;;  %v1179_v12 = vsel %vm554_vm6, %v1177_v10, %v1175_v7 }
 0x35d   : > { %1143 = vst.msk [vmem:[#allocation3 + $0x5] ss:$8 sm:$0x3] %vm2100_vm13, %v1140_v8  ;;  %v1162_v38 = vrot.slane %v1155_v9, %v2093_v57  ;;  %v1180_v39 = vmul.f32 %v1178_v11, %v526_v29  ;;  %v1181_v14 = vmul.f32 %v1179_v12, %v527_v30 }
 0x35e   : > { %v1204_v52 = vpop.permute.xlu0 %1203 }
 0x35f   : > { %v1169_v53 = vrot.slane %v1162_v38, %v2093_v57  ;;  %v1184_v54 = vcombine.low %v1180_v39, %v1181_v14  ;;  %v1206_v15 = vpop.permute.xlu1 %1205  ;;  %v1363_v38 = vld [vmem:[%s2290_s9] sm:$0x1] }
 0x360   : > { %v1207_v36 = vsel %vm579_vm7, %v1204_v52, %v1206_v15  ;;  %v1208_v16 = vsel %vm579_vm7, %v1206_v15, %v1204_v52 }
 0x361   : > { %1172 = vst.msk [vmem:[#allocation3 + $0x6] ss:$8 sm:$0x3] %vm2100_vm13, %v1169_v53  ;;  %v1191_v21 = vrot.slane %v1184_v54, %v2093_v57  ;;  %v1215_v22 = vmul.f32 %v1211_v13, %v1207_v36  ;;  %v1216_v29 = vmul.f32 %v1212_v49, %v1208_v16 }
 0x363   : > { %v1198_v30 = vrot.slane %v1191_v21, %v2093_v57  ;;  %v1219_v37 = vcombine.low %v1215_v22, %v1216_v29 }
 0x365   : > { %1201 = vst.msk [vmem:[#allocation3 + $0x7] ss:$8 sm:$0x3] %vm2100_vm13, %v1198_v30  ;;  %v1226_v17 = vrot.slane %v1219_v37, %v2093_v57 }
 0x367   : > { %v1233_v18 = vrot.slane %v1226_v17, %v2093_v57 }
 0x369   : > { %1236 = vst.msk [vmem:[#allocation3 + $0x10] ss:$8 sm:$0x3] %vm2100_vm13, %v1233_v18 }
 0x36c   : > { %v1238_v19 = vld [vmem:[#allocation3] sm:$0xff]  ;;  %v1239_v34 = vld [vmem:[#allocation3 + $0x8] sm:$0xff] }
 0x36f   : > { %v1255_v40 = vpop.permute.xlu0 %1254 }
 0x370   : > { %v1240_v26 = vld [vmem:[#allocation3 + $0x10] sm:$0x1]  ;;  %v1241_v24 = vld [vmem:[#allocation3 + $0x18] sm:$0x1]  ;;  %v1260_v42 = vpop.permute.xlu1 %1259 }
 0x371   : > { %v1242_v25 = vpack.c.bf16 %v1240_v26, %v1238_v19  ;;  %v1243_v35 = vpack.c.bf16 %v1241_v24, %v1239_v34 }
 0x373   : > { %v1293_v32 = vand.u32 %v1291_v28, %v1242_v25  ;;  %v1296_v59 = vand.u32 %v1291_v28, %v1243_v35  ;;  %v1265_v20 = vpop.permute.xlu0 %1264 }
 0x374   : > { %v1270_v47 = vpop.permute.xlu1 %1269 }
 0x375   : > { %1298 = vmatprep.subr.bf16.mxu1 %v1296_v59 }
 0x376   : > { %1299 = vmatpush1.bf16.msra.mxu1 %v1293_v32 }
 0x377   : > { %v1368_v39 = vpop.permute.xlu0 %1367 }
 0x378   : > { %v1373_v14 = vrot.slane %v1368_v39, %v1949_v31 }
 0x379   : > { %1557 = vmatmul.mubr.msk.bf16.vlgmr.msra.gmra.mrb[4].mxu1 %vm1282_vm15, %v1669_v60 }
 0x37a   : > { %1340 = vmatprep.mubr.bf16.mxu1 %v1774_v6 }
 0x381   : > { %1558 = vmatmul.mubr.msk.bf16.gmra.mrb[8].mxu1 %vm1282_vm15, %v1670_v61 }
 0x382   : > { %1410 = vmatprep.mubr.bf16.mxu1 %v1774_v6 }
 0x44c   : > { %v1332_v33 = vpop.f32.mrb[4].mxu1 }
 0x44d   : > { %v1333_v62 = vadd.f32 %v1332_v33, %v1255_v40  ;;  %v1334_v41 = vpop.f32.mrb[5].mxu1 }
 0x44e   : > { %v1335_v43 = vadd.f32 %v1334_v41, %v1255_v40  ;;  %v1336_v45 = vpop.f32.mrb[6].mxu1 }
 0x44f   : > { %v1337_v50 = vadd.f32 %v1336_v45, %v1260_v42  ;;  %v1338_v51 = vpop.f32.mrb[7].mxu1  ;;  %v1351_v56 = vmax.f32 %v1333_v62, 0.0 }
 0x450   : > { %v1339_v55 = vadd.f32 %v1338_v51, %v1260_v42  ;;  %v1352_v63 = vmax.f32 %v1335_v43, 0.0 }
 0x451   : > { %v1353_v58 = vmax.f32 %v1337_v50, 0.0 }
 0x452   : > { %v1354_v0 = vmax.f32 %v1339_v55, 0.0 }
 0x453   : > { %v1359_v23 = vpack.c.bf16 %v1353_v58, %v1351_v56 }
 0x454   : > { %v1360_v2 = vpack.c.bf16 %v1354_v0, %v1352_v63  ;;  %v1342_v44 = vpop.f32.mrb[8].mxu1 }
 0x455   : > { %v1343_v46 = vadd.f32 %v1342_v44, %v1265_v20  ;;  %v1344_v6 = vpop.f32.mrb[9].mxu1 }
 0x456   : > { %v1345_v48 = vadd.f32 %v1344_v6, %v1265_v20  ;;  %v1346_v3 = vpop.f32.mrb[10].mxu1  ;;  %1378 = vmatprep.subr.bf16.mxu1 %v1360_v2 }
 0x457   : > { %v1347_v4 = vadd.f32 %v1346_v3, %v1270_v47  ;;  %v1348_v5 = vpop.f32.mrb[11].mxu1  ;;  %1379 = vmatpush1.bf16.msra.mxu1 %v1359_v23  ;;  %v1355_v8 = vmax.f32 %v1343_v46, 0.0 }
 0x458   : > { %v1349_v7 = vadd.f32 %v1348_v5, %v1270_v47  ;;  %v1356_v10 = vmax.f32 %v1345_v48, 0.0 }
 0x459   : > { %v1357_v9 = vmax.f32 %v1347_v4, 0.0 }
 0x45a   : > { %v1358_v11 = vmax.f32 %v1349_v7, 0.0 }
 0x45b   : > { %v1361_v12 = vpack.c.bf16 %v1357_v9, %v1355_v8 }
 0x45c   : > { %v1362_v13 = vpack.c.bf16 %v1358_v11, %v1356_v10 }
 0x45e   : > { %1380 = vmatprep.subr.bf16.mxu1 %v1362_v13 }
 0x45f   : > { %1381 = vmatpush1.bf16.msra.mxu1 %v1361_v12 }
 0x462   : > { %1559 = vmatmul.mubr.msk.bf16.vlgmr.msra.gmra.mrb[12].mxu1 %vm1374_vm0, %v1363_v38 }
 0x535   : > { %v1412_v49 = vpop.f32.mrb[12].mxu1 }
 0x536   : > { %v1413_v52 = vadd.f32 %v1412_v49, %v1373_v14  ;;  %v1414_v53 = vpop.f32.mrb[13].mxu1 }
 0x537   : > { %v1415_v54 = vadd.f32 %v1414_v53, %v1373_v14  ;;  %v1416_v15 = vpop.f32.mrb[14].mxu1 }
 0x538   : > { %v1560_v36 = vmul.f32 -1.442695, %v1413_v52  ;;  %v1417_v16 = vpop.f32.mrb[15].mxu1 }
 0x539   : > { %v1561_v21 = vmul.f32 -1.442695, %v1415_v54 }
 0x53a   : > { %1679 = vpow2.f32 %v1560_v36 }
 0x53b   : > { %1681 = vpow2.f32 %v1561_v21 }
 0x544   : > { %v1680_v22 = vpop.eup %1679 }
 0x545   : > { %v1682_v29 = vpop.eup %1681  ;;  %v1425_v30 = vadd.f32 1.0, %v1680_v22 }
 0x546   : > { %v1426_v37 = vadd.f32 1.0, %v1682_v29 }
 0x547   : > { %1683 = vrcp.f32 %v1425_v30 }
 0x548   : > { %1685 = vrcp.f32 %v1426_v37 }
 0x551   : > { %v1684_v31 = vpop.eup %1683 }
 0x552   : > { %v1686_v17 = vpop.eup %1685 }
 0x553   : > { %v1433_v18 = vcombine.low %v1684_v31, %v1686_v17 }
 0x555   : > { %v1440_v27 = vrot.slane %v1433_v18, %v2093_v57 }
 0x557   : > { %v1447_v19 = vrot.slane %v1440_v27, %v2093_v57 }
 0x559   : > { %1449 = vst.msk [vmem:[%s361_s30] sm:$0x3] %vm2100_vm13, %v1447_v19 }
 0x55a   : > { %1712 = shalt.err (!%p1709_p8)
}
 0x55b   : > { %s1713_s22 = scalar_lea.hbm %s2237_s15, 32  ;;  %s1717_s30 = scalar_lea.hbm %s2291_s11, 64 }
 0x55c   : > { %p1714_p9 = scmp.ne.s32.totalorder %s2237_s15, %s1713_s22  ;;  %p1718_p0 = scmp.lt.u32.totalorder %s2237_s15, %s2291_s11 }
 0x55d   : > { %p1719_p1 = scmp.lt.u32.totalorder %s1717_s30, %s1713_s22  ;;  %p1721_p3 = scmp.lt.u32.totalorder %s1713_s22, %s2237_s15 }
 0x55e   : > { %p1715_p12 = pnand %p1714_p9, %p1882_p10 }
 0x55f   : > { %p1720_p2 = por %p1719_p1, %p1718_p0 }
 0x560   : > { %p1716_p13 = pneg %p1715_p12 }
 0x561   : > { %p1722_p4 = por %p1721_p3, %p1720_p2 }
 0x563   : > { %p1723_p5 = pnand %p1722_p4, %p1716_p13 }
 0x565   : > { %1726 = shalt.err (!%p1723_p5)
}
 0x566   : > { %1570 = dma.vmem_to_hbm [thread:$0]  (%p1882_p10), %s2239_s20, 32, %s2237_s15, %s1451_s26  }
 0x567 PF: > { %p1576_p6 = scmp.ge.s32.totalorder %s1763_s25, 2  ;;  %s1477_s17 = sand.u32 1, %s1751_s0  }
 0x568   : > { %s1478_s18 = scalar_lea.sflag [#allocation8], %s1477_s17 }
 0x569   : > { %p1573_p7 = pnand %p1576_p6, %p1886_p11 }
 0x56b   : > { %1746 = dma.done.wait (!%p1573_p7), %s1478_s18, 32  }
 0x56c   : > { %1748 = vsyncadd (!%p1573_p7), %s1478_s18, 4294967264  ;;  %p29_p8 = scmp.ge.s32.totalorder %s1869_s28, 4   ;;  %s2318_s0 = smov %s1755_s24 }
 0x56d   : > { %s2319_s24 = smov %s1759_s10  ;;  %s2320_s10 = smov %s1880_s12 }
 0x56e   : > { %s2321_s25 = smov %s1869_s28  ;;  %31 = sbr.rel (!%p29_p8) target bundleno = 18 (0x12), region = 107 }
 0x575   :  { %1483 = vsyncpa [#allocation8], 1 }
 0x576   :  { %1485 = vsyncpa [#allocation8 + $0x1], 1 }

</bundles_post_ra>
